<compile_context>
chip_gen: v7x
topology: tpu7x:2x2x1
jax: 0.10.0
libtpu: 0.0.40
codegen_flags: <defaults>
</compile_context>

<pallas_src>
import numpy as np
import jax
import jax.numpy as jnp
from jax import lax
from jax.experimental import pallas as pl
from jax.experimental.pallas import tpu as pltpu

_CLUSTER_ALIGN = 16      # bf16 sublane packing -> pad cluster rows to 16
_MAX_CLUSTER_TILE = 64   # per-grid-step cluster tile (parallel across cores)


# --------------------------------------------------------------------------- #
# Pallas kernel
# --------------------------------------------------------------------------- #
def _bilstm_kernel(x_ref, lens_ref, wih_f_ref, wih_b_ref,
                   whh_f_ref, whh_b_ref, b_f_ref, b_b_ref,
                   out_f_ref, out_b_ref, gxf_scr, gxb_scr):
    """Fused bidirectional LSTM with packed-sequence (per-row length) semantics.

    x_ref     : (T, Ct, D) bf16  time-major inputs for this cluster tile
    lens_ref  : (Ct, 1)    i32   valid length per cluster row
    wih_*_ref : (D, 4H)    bf16  input weights (transposed), gate order i,f,o,g
    whh_*_ref : (H, 4H)    bf16  recurrent weights (transposed), order i,f,o,g
    b_*_ref   : (1, 4H)    f32   fused biases (b_ih + b_hh), order i,f,o,g
    out_*_ref : (T, Ct, H) f32   forward / backward hidden states
    gx*_scr   : (T*Ct, 4H) bf16  precomputed input-projection gates
    """
    T, Ct, H = out_f_ref.shape
    D = x_ref.shape[-1]
    G = 4 * H

    # ---- hoisted input projection: two big MXU matmuls, written once --------
    # Ct is a multiple of 16 (bf16 sublane tile), so this merge is layout-free.
    x2d = x_ref[...].reshape(T * Ct, D)                               # bf16
    gxf_scr[...] = (jnp.dot(x2d, wih_f_ref[...],
                            preferred_element_type=jnp.float32)
                    + b_f_ref[...]).astype(jnp.bfloat16)
    gxb_scr[...] = (jnp.dot(x2d, wih_b_ref[...],
                            preferred_element_type=jnp.float32)
                    + b_b_ref[...]).astype(jnp.bfloat16)

    # ---- loop-invariant loads hoisted out of the recurrence ----
    lens = lens_ref[...]                          # (Ct, 1) int32
    whh_f = whh_f_ref[...]                        # (H, 4H) bf16
    whh_b = whh_b_ref[...]                        # (H, 4H) bf16
    h0 = jnp.zeros((Ct, H), jnp.bfloat16)
    c0 = jnp.zeros((Ct, H), jnp.float32)

    def gate_math(gates, c):
        # gate order (i, f, o, g): one sigmoid launch + one tanh launch
        sig = jax.nn.sigmoid(gates[:, 0:3 * H])
        g_g = jnp.tanh(gates[:, 3 * H:4 * H])
        i_g = sig[:, 0:H]
        f_g = sig[:, H:2 * H]
        o_g = sig[:, 2 * H:3 * H]
        c_new = f_g * c + i_g * g_g
        h_new = o_g * jnp.tanh(c_new)
        return h_new, c_new

    def body(idx, carry):
        h_f, c_f, h_b, c_b = carry
        t = idx                                   # forward timestep
        tb = T - 1 - idx                          # backward timestep
        row_f = pl.multiple_of(t * Ct, Ct)
        row_b = pl.multiple_of(tb * Ct, Ct)
        gx_f = gxf_scr[pl.ds(row_f, Ct), :].astype(jnp.float32)   # (Ct, 4H)
        gx_b = gxb_scr[pl.ds(row_b, Ct), :].astype(jnp.float32)

        # only the small bf16 recurrent matmuls stay on the serial critical
        # path; fwd/bwd are independent chains and overlap on MXU/EUP.
        gates_f = gx_f + jnp.dot(h_f, whh_f, preferred_element_type=jnp.float32)
        gates_b = gx_b + jnp.dot(h_b, whh_b, preferred_element_type=jnp.float32)
        hf, c_f = gate_math(gates_f, c_f)
        hb, c_b = gate_math(gates_b, c_b)

        # packed-sequence semantics: padding is a suffix.  Keep the bwd state
        # zero while tb >= len so the backward pass starts at each row's true
        # last valid step; zero the stored fwd output for t >= len so padded
        # positions match pad_packed_sequence (exact zeros).
        valid_f = t < lens                        # (Ct, 1)
        valid_b = tb < lens
        hb = jnp.where(valid_b, hb, 0.0)
        c_b = jnp.where(valid_b, c_b, 0.0)

        out_f_ref[t] = jnp.where(valid_f, hf, 0.0)
        out_b_ref[tb] = hb
        return (hf.astype(jnp.bfloat16), c_f, hb.astype(jnp.bfloat16), c_b)

    lax.fori_loop(0, T, body, (h0, c0, h0, c0), unroll=4)


# --------------------------------------------------------------------------- #
# Wrappers
# --------------------------------------------------------------------------- #
def _vmem_physical_bytes():
    try:
        return int(pltpu.get_tpu_info().vmem_capacity_bytes)
    except Exception:
        return 128 << 20


def bilstm_pallas(x_tm, lens, params):
    """x_tm: (T, Cp, D) f32 numpy, time-major, Cp a multiple of 16 (and of the
       cluster tile).  lens: (Cp,) int.  Returns (out_f, out_b): (T, Cp, H) f32."""
    T, Cp, D = x_tm.shape
    H = D // 2
    G = 4 * H
    Ct = Cp if Cp <= _MAX_CLUSTER_TILE else _MAX_CLUSTER_TILE
    assert Cp % Ct == 0 and Ct % _CLUSTER_ALIGN == 0
    n_tiles = Cp // Ct

    x3 = jnp.asarray(x_tm).astype(jnp.bfloat16)
    lens_d = jnp.asarray(lens.reshape(Cp, 1).astype(np.int32))

    wih_f = params["wih_f_T"]; wih_b = params["wih_b_T"]      # (D, 4H) bf16
    whh_f = params["whh_f_T"]; whh_b = params["whh_b_T"]      # (H, 4H) bf16
    b_f = params["b_f"]; b_b = params["b_b"]                  # (1, 4H) f32

    # --- per-generation VMEM budget: ~80% of physical, ~1.3x headroom --------
    block_bytes = (
        2 * T * Ct * D * 2            # x tile (bf16, double-buffered)
        + 2 * Ct * 4                  # lens tile
        + 2 * 2 * D * G * 2           # wih fwd/bwd (bf16, double-buffered)
        + 2 * 2 * H * G * 2           # whh fwd/bwd
        + 2 * 2 * G * 4               # biases
        + 2 * 2 * T * Ct * H * 4      # two f32 output tiles (double-buffered)
        + 2 * T * Ct * G * 2          # two bf16 gx scratches
    )
    cap = int(0.80 * _vmem_physical_bytes())   # ~102 MiB v5e/v6e, ~51 MiB v7x
    vmem_limit = max(16 << 20, min(cap, int(1.3 * block_bytes)))
    # TODO(synk): if 1.3*block_bytes exceeds `cap`, stream x / outputs over T
    # chunks with pltpu.emit_pipeline instead of keeping the tile VMEM-resident.

    grid_spec = pltpu.PrefetchScalarGridSpec(
        num_scalar_prefetch=0,
        grid=(n_tiles,),
        in_specs=[
            pl.BlockSpec((T, Ct, D), lambda c: (0, c, 0)),
            pl.BlockSpec((Ct, 1), lambda c: (c, 0)),
            pl.BlockSpec((D, G), lambda c: (0, 0)),
            pl.BlockSpec((D, G), lambda c: (0, 0)),
            pl.BlockSpec((H, G), lambda c: (0, 0)),
            pl.BlockSpec((H, G), lambda c: (0, 0)),
            pl.BlockSpec((1, G), lambda c: (0, 0)),
            pl.BlockSpec((1, G), lambda c: (0, 0)),
        ],
        out_specs=(
            pl.BlockSpec((T, Ct, H), lambda c: (0, c, 0)),
            pl.BlockSpec((T, Ct, H), lambda c: (0, c, 0)),
        ),
        scratch_shapes=[pltpu.VMEM((T * Ct, G), jnp.bfloat16),
                        pltpu.VMEM((T * Ct, G), jnp.bfloat16)],
    )

    out_f, out_b = pl.pallas_call(
        _bilstm_kernel,
        out_shape=(jax.ShapeDtypeStruct((T, Cp, H), jnp.float32),
                   jax.ShapeDtypeStruct((T, Cp, H), jnp.float32)),
        grid_spec=grid_spec,
        compiler_params=pltpu.CompilerParams(
            dimension_semantics=("parallel",),
            vmem_limit_bytes=vmem_limit),
    )(x3, lens_d, wih_f, wih_b, whh_f, whh_b, b_f, b_b)
    return out_f, out_b


def _reorder_ifgo_to_ifog(w):
    """Rows in PyTorch LSTM gate order (i,f,g,o) -> (i,f,o,g)."""
    Hh = w.shape[0] // 4
    return np.concatenate([w[:2 * Hh], w[3 * Hh:], w[2 * Hh:3 * Hh]], axis=0)


def init_params(key, dim):
    """nn.LSTM(dim, dim//2, bidirectional=True) parameters, uniform init."""
    H = dim // 2
    bound = 1.0 / np.sqrt(H)
    ks = jax.random.split(key, 8)

    def u(kk, shape):
        return np.asarray(jax.random.uniform(kk, shape, jnp.float32, -bound, bound))

    w_ih_f = u(ks[0], (4 * H, dim)); w_hh_f = u(ks[1], (4 * H, H))
    b_ih_f = u(ks[2], (4 * H,));     b_hh_f = u(ks[3], (4 * H,))
    w_ih_b = u(ks[4], (4 * H, dim)); w_hh_b = u(ks[5], (4 * H, H))
    b_ih_b = u(ks[6], (4 * H,));     b_hh_b = u(ks[7], (4 * H,))

    r = _reorder_ifgo_to_ifog
    return {
        # raw PyTorch-order weights (for the numpy reference check)
        "w_ih_f": w_ih_f, "w_hh_f": w_hh_f, "b_ih_f": b_ih_f, "b_hh_f": b_hh_f,
        "w_ih_b": w_ih_b, "w_hh_b": w_hh_b, "b_ih_b": b_ih_b, "b_hh_b": b_hh_b,
        # kernel operands: gate order (i,f,o,g), bf16 matmul operands
        "wih_f_T": jnp.asarray(r(w_ih_f).T, jnp.bfloat16),   # (D, 4H)
        "wih_b_T": jnp.asarray(r(w_ih_b).T, jnp.bfloat16),
        "whh_f_T": jnp.asarray(r(w_hh_f).T, jnp.bfloat16),   # (H, 4H)
        "whh_b_T": jnp.asarray(r(w_hh_b).T, jnp.bfloat16),
        "b_f": jnp.asarray(r(b_ih_f + b_hh_f).reshape(1, 4 * H), jnp.float32),
        "b_b": jnp.asarray(r(b_ih_b + b_hh_b).reshape(1, 4 * H), jnp.float32),
    }


def speaker_rnn_forward(x, context_mask, speakers, params):
    """Mirrors SpeakerRNN.forward. x:(B,S,D) f32, mask:(B,S) bool, spk:(B,S)."""
    # TODO(synk): torch.unique / pack_padded_sequence grouping has data-dependent
    # shapes (cluster count, max length); it is performed host-side with numpy.
    x_np = np.asarray(x)
    mask_np = np.asarray(context_mask)
    spk_np = np.asarray(speakers)
    B, S, D = x_np.shape
    H = D // 2

    train_seq = x_np[mask_np]                         # (N, D)
    clusters = spk_np[mask_np]                        # (N,)
    unique_id, seqlens = np.unique(clusters, return_counts=True)
    num_clusters = unique_id.shape[0]
    T = int(seqlens.max())
    align = _CLUSTER_ALIGN if num_clusters <= _MAX_CLUSTER_TILE else _MAX_CLUSTER_TILE
    Cp = -(-num_clusters // align) * align            # pad clusters for layout

    x_tm = np.zeros((T, Cp, D), np.float32)           # time-major: no transposes
    lens = np.zeros((Cp,), np.int32)
    sels = []
    for i in range(num_clusters):
        sel = clusters == unique_id[i]
        sels.append(sel)
        x_tm[:seqlens[i], i, :] = train_seq[sel]
        lens[i] = seqlens[i]

    out_f, out_b = bilstm_pallas(x_tm, lens, params)
    out_f = np.asarray(jax.block_until_ready(out_f))
    out_b = np.asarray(out_b)
    rnn_out = np.concatenate([out_f, out_b], axis=-1)  # (T, Cp, 2H)

    recollect = np.zeros((train_seq.shape[0], 2 * H), np.float32)
    for i in range(num_clusters):
        recollect[sels[i]] = rnn_out[:seqlens[i], i, :]

    out = np.zeros((B, S, 2 * H), np.float32)
    out[mask_np] = recollect
    return jnp.asarray(out)


# --------------------------------------------------------------------------- #
# numpy reference (PyTorch nn.LSTM semantics) for validation
# --------------------------------------------------------------------------- #
def _sigmoid(v):
    return 1.0 / (1.0 + np.exp(-v))


def _lstm_dir_ref(x_seq, w_ih, w_hh, b, reverse):
    L = x_seq.shape[0]
    H = w_hh.shape[1]
    h = np.zeros((H,), np.float32)
    c = np.zeros((H,), np.float32)
    out = np.zeros((L, H), np.float32)
    order = range(L - 1, -1, -1) if reverse else range(L)
    for t in order:
        g = w_ih @ x_seq[t] + w_hh @ h + b
        i = _sigmoid(g[0:H]); f = _sigmoid(g[H:2 * H])
        gg = np.tanh(g[2 * H:3 * H]); o = _sigmoid(g[3 * H:4 * H])
        c = f * c + i * gg
        h = o * np.tanh(c)
        out[t] = h
    return out


def _speaker_rnn_reference(x, mask, spk, params):
    B, S, D = x.shape
    H = D // 2
    train_seq = x[mask]
    clusters = spk[mask]
    uid, _ = np.unique(clusters, return_counts=True)
    recollect = np.zeros((train_seq.shape[0], 2 * H), np.float32)
    for i in range(uid.shape[0]):
        sel = clusters == uid[i]
        xs = train_seq[sel].astype(np.float32)
        hf = _lstm_dir_ref(xs, params["w_ih_f"], params["w_hh_f"],
                           params["b_ih_f"] + params["b_hh_f"], reverse=False)
        hb = _lstm_dir_ref(xs, params["w_ih_b"], params["w_hh_b"],
                           params["b_ih_b"] + params["b_hh_b"], reverse=True)
        recollect[sel] = np.concatenate([hf, hb], axis=-1)
    out = np.zeros((B, S, 2 * H), np.float32)
    out[mask] = recollect
    return out


# --------------------------------------------------------------------------- #
if __name__ == "__main__":
    B, S, D = 2, 8, 32                       # dim must be even (hidden = D // 2)
    key = jax.random.PRNGKey(0)
    kx, km, ks, kp = jax.random.split(key, 4)

    x = jax.random.normal(kx, (B, S, D), jnp.float32)
    context_mask = jax.random.uniform(km, (B, S)) > 0.3
    context_mask = context_mask.at[:, 0].set(True)     # ensure non-empty mask
    speakers = jax.random.randint(ks, (B, S), 0, 3)

    params = init_params(kp, D)
    out = speaker_rnn_forward(x, context_mask, speakers, params)
    out = jax.block_until_ready(out)

    assert out.shape == (B, S, D), out.shape
    assert bool(jnp.all(jnp.isfinite(out)))
    # positions outside the context mask must be exactly zero (as in the module)
    assert bool(jnp.all(jnp.where(context_mask[..., None], True, out == 0.0)))

    # validate against a full-precision numpy reference (bf16 matmuls => loose tol)
    ref = _speaker_rnn_reference(np.asarray(x), np.asarray(context_mask),
                                 np.asarray(speakers), params)
    assert np.allclose(np.asarray(out), ref, rtol=5e-2, atol=5e-2)

    print("KERNEL_OK")
</pallas_src>

<mosaic_0001>
module attributes {stable_mosaic.version = 11 : i64} {
  func.func @_bilstm_kernel(%arg0: i32, %arg1: memref<4x16x32xbf16, #tpu.memory_space<vmem>>, %arg2: memref<16x1xi32, #tpu.memory_space<vmem>>, %arg3: memref<32x64xbf16, #tpu.memory_space<vmem>>, %arg4: memref<32x64xbf16, #tpu.memory_space<vmem>>, %arg5: memref<16x64xbf16, #tpu.memory_space<vmem>>, %arg6: memref<16x64xbf16, #tpu.memory_space<vmem>>, %arg7: memref<1x64xf32, #tpu.memory_space<vmem>>, %arg8: memref<1x64xf32, #tpu.memory_space<vmem>>, %arg9: memref<4x16x16xf32, #tpu.memory_space<vmem>>, %arg10: memref<4x16x16xf32, #tpu.memory_space<vmem>>, %arg11: memref<64x64xbf16, #tpu.memory_space<vmem>>, %arg12: memref<64x64xbf16, #tpu.memory_space<vmem>>) attributes {dimension_semantics = [#tpu.dimension_semantics<parallel>], iteration_bounds = array<i64: 1>, scalar_prefetch = 0 : i64, scratch_operands = 2 : i64, tpu.core_type = #tpu.core_type<tc>, window_params = [{transform_indices = @transform_0, window_bounds = array<i64: 4, 16, 32>}, {transform_indices = @transform_1, window_bounds = array<i64: 16, 1>}, {pipeline_mode = #tpu.pipeline_mode<synchronous>, transform_indices = @transform_2, window_bounds = array<i64: 32, 64>}, {pipeline_mode = #tpu.pipeline_mode<synchronous>, transform_indices = @transform_3, window_bounds = array<i64: 32, 64>}, {pipeline_mode = #tpu.pipeline_mode<synchronous>, transform_indices = @transform_4, window_bounds = array<i64: 16, 64>}, {pipeline_mode = #tpu.pipeline_mode<synchronous>, transform_indices = @transform_5, window_bounds = array<i64: 16, 64>}, {pipeline_mode = #tpu.pipeline_mode<synchronous>, transform_indices = @transform_6, window_bounds = array<i64: 1, 64>}, {pipeline_mode = #tpu.pipeline_mode<synchronous>, transform_indices = @transform_7, window_bounds = array<i64: 1, 64>}, {transform_indices = @transform_8, window_bounds = array<i64: 4, 16, 16>}, {transform_indices = @transform_9, window_bounds = array<i64: 4, 16, 16>}]} {
    %c0 = arith.constant 0 : index
    %c0_0 = arith.constant 0 : index
    %c0_1 = arith.constant 0 : index
    %0 = vector.load %arg1[%c0, %c0_0, %c0_1] : memref<4x16x32xbf16, #tpu.memory_space<vmem>>, vector<4x16x32xbf16>
    %1 = vector.shape_cast %0 : vector<4x16x32xbf16> to vector<64x32xbf16>
    %c0_2 = arith.constant 0 : index
    %c0_3 = arith.constant 0 : index
    %2 = vector.load %arg3[%c0_2, %c0_3] : memref<32x64xbf16, #tpu.memory_space<vmem>>, vector<32x64xbf16>
    %cst = arith.constant dense<0.000000e+00> : vector<64x64xf32>
    %3 = tpu.matmul %1, %2, %cst {dimension_numbers = #tpu.dot_dimension_numbers<[1], [0], [0], [1], [0, 0, 1, 1], [], []>} : vector<64x32xbf16>, vector<32x64xbf16>, vector<64x64xf32> -> vector<64x64xf32>
    %c0_4 = arith.constant 0 : index
    %c0_5 = arith.constant 0 : index
    %4 = vector.load %arg7[%c0_4, %c0_5] : memref<1x64xf32, #tpu.memory_space<vmem>>, vector<1x64xf32>
    %5 = vector.broadcast %4 : vector<1x64xf32> to vector<64x64xf32>
    %6 = arith.addf %3, %5 : vector<64x64xf32>
    %7 = arith.truncf %6 : vector<64x64xf32> to vector<64x64xbf16>
    %c0_6 = arith.constant 0 : index
    %c0_7 = arith.constant 0 : index
    %8 = vector.load %arg11[%c0_6, %c0_7] : memref<64x64xbf16, #tpu.memory_space<vmem>>, vector<64x64xbf16>
    tpu.vector_store %arg11[%c0_6, %c0_7], %7 {strides = array<i32>} : memref<64x64xbf16, #tpu.memory_space<vmem>>, vector<64x64xbf16>,
    %c0_8 = arith.constant 0 : index
    %c0_9 = arith.constant 0 : index
    %9 = vector.load %arg4[%c0_8, %c0_9] : memref<32x64xbf16, #tpu.memory_space<vmem>>, vector<32x64xbf16>
    %cst_10 = arith.constant dense<0.000000e+00> : vector<64x64xf32>
    %10 = tpu.matmul %1, %9, %cst_10 {dimension_numbers = #tpu.dot_dimension_numbers<[1], [0], [0], [1], [0, 0, 1, 1], [], []>} : vector<64x32xbf16>, vector<32x64xbf16>, vector<64x64xf32> -> vector<64x64xf32>
    %c0_11 = arith.constant 0 : index
    %c0_12 = arith.constant 0 : index
    %11 = vector.load %arg8[%c0_11, %c0_12] : memref<1x64xf32, #tpu.memory_space<vmem>>, vector<1x64xf32>
    %12 = vector.broadcast %11 : vector<1x64xf32> to vector<64x64xf32>
    %13 = arith.addf %10, %12 : vector<64x64xf32>
    %14 = arith.truncf %13 : vector<64x64xf32> to vector<64x64xbf16>
    %c0_13 = arith.constant 0 : index
    %c0_14 = arith.constant 0 : index
    %15 = vector.load %arg12[%c0_13, %c0_14] : memref<64x64xbf16, #tpu.memory_space<vmem>>, vector<64x64xbf16>
    tpu.vector_store %arg12[%c0_13, %c0_14], %14 {strides = array<i32>} : memref<64x64xbf16, #tpu.memory_space<vmem>>, vector<64x64xbf16>,
    %c0_15 = arith.constant 0 : index
    %c0_16 = arith.constant 0 : index
    %16 = vector.load %arg2[%c0_15, %c0_16] : memref<16x1xi32, #tpu.memory_space<vmem>>, vector<16x1xi32>
    %c0_17 = arith.constant 0 : index
    %c0_18 = arith.constant 0 : index
    %17 = vector.load %arg5[%c0_17, %c0_18] : memref<16x64xbf16, #tpu.memory_space<vmem>>, vector<16x64xbf16>
    %c0_19 = arith.constant 0 : index
    %c0_20 = arith.constant 0 : index
    %18 = vector.load %arg6[%c0_19, %c0_20] : memref<16x64xbf16, #tpu.memory_space<vmem>>, vector<16x64xbf16>
    %cst_21 = arith.constant 0.000000e+00 : bf16
    %19 = vector.broadcast %cst_21 : bf16 to vector<16x16xbf16>
    %cst_22 = arith.constant 0.000000e+00 : f32
    %20 = vector.broadcast %cst_22 : f32 to vector<16x16xf32>
    %c0_i32 = arith.constant 0 : i32
    %c3_i32 = arith.constant 3 : i32
    %21 = arith.subi %c3_i32, %c0_i32 : i32
    %c16_i32 = arith.constant 16 : i32
    %22 = arith.muli %c0_i32, %c16_i32 : i32
    %23 = tpu.assume_multiple %22, 16 : i32
    %c16_i32_23 = arith.constant 16 : i32
    %24 = arith.muli %21, %c16_i32_23 : i32
    %25 = tpu.assume_multiple %24, 16 : i32
    %26 = arith.index_cast %23 : i32 to index
    %c0_24 = arith.constant 0 : index
    %27 = vector.load %arg11[%26, %c0_24] : memref<64x64xbf16, #tpu.memory_space<vmem>>, vector<16x64xbf16>
    %28 = arith.extf %27 : vector<16x64xbf16> to vector<16x64xf32>
    %29 = arith.index_cast %25 : i32 to index
    %c0_25 = arith.constant 0 : index
    %30 = vector.load %arg12[%29, %c0_25] : memref<64x64xbf16, #tpu.memory_space<vmem>>, vector<16x64xbf16>
    %31 = arith.extf %30 : vector<16x64xbf16> to vector<16x64xf32>
    %cst_26 = arith.constant dense<0.000000e+00> : vector<16x64xf32>
    %32 = tpu.matmul %19, %17, %cst_26 {dimension_numbers = #tpu.dot_dimension_numbers<[1], [0], [0], [1], [0, 0, 1, 1], [], []>} : vector<16x16xbf16>, vector<16x64xbf16>, vector<16x64xf32> -> vector<16x64xf32>
    %33 = arith.addf %28, %32 : vector<16x64xf32>
    %cst_27 = arith.constant dense<0.000000e+00> : vector<16x64xf32>
    %34 = tpu.matmul %19, %18, %cst_27 {dimension_numbers = #tpu.dot_dimension_numbers<[1], [0], [0], [1], [0, 0, 1, 1], [], []>} : vector<16x16xbf16>, vector<16x64xbf16>, vector<16x64xf32> -> vector<16x64xf32>
    %35 = arith.addf %31, %34 : vector<16x64xf32>
    %36 = vector.extract_strided_slice %33 {offsets = [0, 0], sizes = [16, 48], strides = [1, 1]} : vector<16x64xf32> to vector<16x48xf32>
    %37 = arith.negf %36 : vector<16x48xf32>
    %38 = math.exp %37 : vector<16x48xf32>
    %cst_28 = arith.constant 1.000000e+00 : f32
    %39 = vector.broadcast %cst_28 : f32 to vector<16x48xf32>
    %40 = arith.addf %39, %38 : vector<16x48xf32>
    %41 = arith.divf %39, %40 : vector<16x48xf32>
    %42 = vector.extract_strided_slice %33 {offsets = [0, 48], sizes = [16, 16], strides = [1, 1]} : vector<16x64xf32> to vector<16x16xf32>
    %43 = math.tanh %42 : vector<16x16xf32>
    %44 = vector.extract_strided_slice %41 {offsets = [0, 0], sizes = [16, 16], strides = [1, 1]} : vector<16x48xf32> to vector<16x16xf32>
    %45 = vector.extract_strided_slice %41 {offsets = [0, 16], sizes = [16, 16], strides = [1, 1]} : vector<16x48xf32> to vector<16x16xf32>
    %46 = vector.extract_strided_slice %41 {offsets = [0, 32], sizes = [16, 16], strides = [1, 1]} : vector<16x48xf32> to vector<16x16xf32>
    %47 = arith.mulf %45, %20 : vector<16x16xf32>
    %48 = arith.mulf %44, %43 : vector<16x16xf32>
    %49 = arith.addf %47, %48 : vector<16x16xf32>
    %50 = math.tanh %49 : vector<16x16xf32>
    %51 = arith.mulf %46, %50 : vector<16x16xf32>
    %52 = vector.extract_strided_slice %35 {offsets = [0, 0], sizes = [16, 48], strides = [1, 1]} : vector<16x64xf32> to vector<16x48xf32>
    %53 = arith.negf %52 : vector<16x48xf32>
    %54 = math.exp %53 : vector<16x48xf32>
    %cst_29 = arith.constant 1.000000e+00 : f32
    %55 = vector.broadcast %cst_29 : f32 to vector<16x48xf32>
    %56 = arith.addf %55, %54 : vector<16x48xf32>
    %57 = arith.divf %55, %56 : vector<16x48xf32>
    %58 = vector.extract_strided_slice %35 {offsets = [0, 48], sizes = [16, 16], strides = [1, 1]} : vector<16x64xf32> to vector<16x16xf32>
    %59 = math.tanh %58 : vector<16x16xf32>
    %60 = vector.extract_strided_slice %57 {offsets = [0, 0], sizes = [16, 16], strides = [1, 1]} : vector<16x48xf32> to vector<16x16xf32>
    %61 = vector.extract_strided_slice %57 {offsets = [0, 16], sizes = [16, 16], strides = [1, 1]} : vector<16x48xf32> to vector<16x16xf32>
    %62 = vector.extract_strided_slice %57 {offsets = [0, 32], sizes = [16, 16], strides = [1, 1]} : vector<16x48xf32> to vector<16x16xf32>
    %63 = arith.mulf %61, %20 : vector<16x16xf32>
    %64 = arith.mulf %60, %59 : vector<16x16xf32>
    %65 = arith.addf %63, %64 : vector<16x16xf32>
    %66 = math.tanh %65 : vector<16x16xf32>
    %67 = arith.mulf %62, %66 : vector<16x16xf32>
    %68 = vector.broadcast %c0_i32 : i32 to vector<16x1xi32>
    %69 = arith.cmpi slt, %68, %16 : vector<16x1xi32>
    %70 = vector.broadcast %21 : i32 to vector<16x1xi32>
    %71 = arith.cmpi slt, %70, %16 : vector<16x1xi32>
    %cst_30 = arith.constant 0.000000e+00 : f32
    %72 = vector.shape_cast %71 : vector<16x1xi1> to vector<16x1xi1>
    %73 = vector.broadcast %72 : vector<16x1xi1> to vector<16x16xi1>
    %74 = vector.broadcast %cst_30 : f32 to vector<16x16xf32>
    %75 = arith.select %73, %67, %74 : vector<16x16xi1>, vector<16x16xf32>
    %cst_31 = arith.constant 0.000000e+00 : f32
    %76 = vector.shape_cast %71 : vector<16x1xi1> to vector<16x1xi1>
    %77 = vector.broadcast %76 : vector<16x1xi1> to vector<16x16xi1>
    %78 = vector.broadcast %cst_31 : f32 to vector<16x16xf32>
    %79 = arith.select %77, %65, %78 : vector<16x16xi1>, vector<16x16xf32>
    %cst_32 = arith.constant 0.000000e+00 : f32
    %80 = vector.shape_cast %69 : vector<16x1xi1> to vector<16x1xi1>
    %81 = vector.broadcast %80 : vector<16x1xi1> to vector<16x16xi1>
    %82 = vector.broadcast %cst_32 : f32 to vector<16x16xf32>
    %83 = arith.select %81, %51, %82 : vector<16x16xi1>, vector<16x16xf32>
    %84 = arith.index_cast %c0_i32 : i32 to index
    %c0_33 = arith.constant 0 : index
    %c0_34 = arith.constant 0 : index
    %85 = vector.load %arg9[%84, %c0_33, %c0_34] : memref<4x16x16xf32, #tpu.memory_space<vmem>>, vector<1x16x16xf32>
    %86 = vector.shape_cast %85 : vector<1x16x16xf32> to vector<16x16xf32>
    %87 = vector.shape_cast %83 : vector<16x16xf32> to vector<1x16x16xf32>
    tpu.vector_store %arg9[%84, %c0_33, %c0_34], %87 {strides = array<i32>} : memref<4x16x16xf32, #tpu.memory_space<vmem>>, vector<1x16x16xf32>,
    %88 = arith.index_cast %21 : i32 to index
    %c0_35 = arith.constant 0 : index
    %c0_36 = arith.constant 0 : index
    %89 = vector.load %arg10[%88, %c0_35, %c0_36] : memref<4x16x16xf32, #tpu.memory_space<vmem>>, vector<1x16x16xf32>
    %90 = vector.shape_cast %89 : vector<1x16x16xf32> to vector<16x16xf32>
    %91 = vector.shape_cast %75 : vector<16x16xf32> to vector<1x16x16xf32>
    tpu.vector_store %arg10[%88, %c0_35, %c0_36], %91 {strides = array<i32>} : memref<4x16x16xf32, #tpu.memory_space<vmem>>, vector<1x16x16xf32>,
    %92 = arith.truncf %51 : vector<16x16xf32> to vector<16x16xbf16>
    %93 = arith.truncf %75 : vector<16x16xf32> to vector<16x16xbf16>
    %c1_i32 = arith.constant 1 : i32
    %c3_i32_37 = arith.constant 3 : i32
    %94 = arith.subi %c3_i32_37, %c1_i32 : i32
    %c16_i32_38 = arith.constant 16 : i32
    %95 = arith.muli %c1_i32, %c16_i32_38 : i32
    %96 = tpu.assume_multiple %95, 16 : i32
    %c16_i32_39 = arith.constant 16 : i32
    %97 = arith.muli %94, %c16_i32_39 : i32
    %98 = tpu.assume_multiple %97, 16 : i32
    %99 = arith.index_cast %96 : i32 to index
    %c0_40 = arith.constant 0 : index
    %100 = vector.load %arg11[%99, %c0_40] : memref<64x64xbf16, #tpu.memory_space<vmem>>, vector<16x64xbf16>
    %101 = arith.extf %100 : vector<16x64xbf16> to vector<16x64xf32>
    %102 = arith.index_cast %98 : i32 to index
    %c0_41 = arith.constant 0 : index
    %103 = vector.load %arg12[%102, %c0_41] : memref<64x64xbf16, #tpu.memory_space<vmem>>, vector<16x64xbf16>
    %104 = arith.extf %103 : vector<16x64xbf16> to vector<16x64xf32>
    %cst_42 = arith.constant dense<0.000000e+00> : vector<16x64xf32>
    %105 = tpu.matmul %92, %17, %cst_42 {dimension_numbers = #tpu.dot_dimension_numbers<[1], [0], [0], [1], [0, 0, 1, 1], [], []>} : vector<16x16xbf16>, vector<16x64xbf16>, vector<16x64xf32> -> vector<16x64xf32>
    %106 = arith.addf %101, %105 : vector<16x64xf32>
    %cst_43 = arith.constant dense<0.000000e+00> : vector<16x64xf32>
    %107 = tpu.matmul %93, %18, %cst_43 {dimension_numbers = #tpu.dot_dimension_numbers<[1], [0], [0], [1], [0, 0, 1, 1], [], []>} : vector<16x16xbf16>, vector<16x64xbf16>, vector<16x64xf32> -> vector<16x64xf32>
    %108 = arith.addf %104, %107 : vector<16x64xf32>
    %109 = vector.extract_strided_slice %106 {offsets = [0, 0], sizes = [16, 48], strides = [1, 1]} : vector<16x64xf32> to vector<16x48xf32>
    %110 = arith.negf %109 : vector<16x48xf32>
    %111 = math.exp %110 : vector<16x48xf32>
    %cst_44 = arith.constant 1.000000e+00 : f32
    %112 = vector.broadcast %cst_44 : f32 to vector<16x48xf32>
    %113 = arith.addf %112, %111 : vector<16x48xf32>
    %114 = arith.divf %112, %113 : vector<16x48xf32>
    %115 = vector.extract_strided_slice %106 {offsets = [0, 48], sizes = [16, 16], strides = [1, 1]} : vector<16x64xf32> to vector<16x16xf32>
    %116 = math.tanh %115 : vector<16x16xf32>
    %117 = vector.extract_strided_slice %114 {offsets = [0, 0], sizes = [16, 16], strides = [1, 1]} : vector<16x48xf32> to vector<16x16xf32>
    %118 = vector.extract_strided_slice %114 {offsets = [0, 16], sizes = [16, 16], strides = [1, 1]} : vector<16x48xf32> to vector<16x16xf32>
    %119 = vector.extract_strided_slice %114 {offsets = [0, 32], sizes = [16, 16], strides = [1, 1]} : vector<16x48xf32> to vector<16x16xf32>
    %120 = arith.mulf %118, %49 : vector<16x16xf32>
    %121 = arith.mulf %117, %116 : vector<16x16xf32>
    %122 = arith.addf %120, %121 : vector<16x16xf32>
    %123 = math.tanh %122 : vector<16x16xf32>
    %124 = arith.mulf %119, %123 : vector<16x16xf32>
    %125 = vector.extract_strided_slice %108 {offsets = [0, 0], sizes = [16, 48], strides = [1, 1]} : vector<16x64xf32> to vector<16x48xf32>
    %126 = arith.negf %125 : vector<16x48xf32>
    %127 = math.exp %126 : vector<16x48xf32>
    %cst_45 = arith.constant 1.000000e+00 : f32
    %128 = vector.broadcast %cst_45 : f32 to vector<16x48xf32>
    %129 = arith.addf %128, %127 : vector<16x48xf32>
    %130 = arith.divf %128, %129 : vector<16x48xf32>
    %131 = vector.extract_strided_slice %108 {offsets = [0, 48], sizes = [16, 16], strides = [1, 1]} : vector<16x64xf32> to vector<16x16xf32>
    %132 = math.tanh %131 : vector<16x16xf32>
    %133 = vector.extract_strided_slice %130 {offsets = [0, 0], sizes = [16, 16], strides = [1, 1]} : vector<16x48xf32> to vector<16x16xf32>
    %134 = vector.extract_strided_slice %130 {offsets = [0, 16], sizes = [16, 16], strides = [1, 1]} : vector<16x48xf32> to vector<16x16xf32>
    %135 = vector.extract_strided_slice %130 {offsets = [0, 32], sizes = [16, 16], strides = [1, 1]} : vector<16x48xf32> to vector<16x16xf32>
    %136 = arith.mulf %134, %79 : vector<16x16xf32>
    %137 = arith.mulf %133, %132 : vector<16x16xf32>
    %138 = arith.addf %136, %137 : vector<16x16xf32>
    %139 = math.tanh %138 : vector<16x16xf32>
    %140 = arith.mulf %135, %139 : vector<16x16xf32>
    %141 = vector.broadcast %c1_i32 : i32 to vector<16x1xi32>
    %142 = arith.cmpi slt, %141, %16 : vector<16x1xi32>
    %143 = vector.broadcast %94 : i32 to vector<16x1xi32>
    %144 = arith.cmpi slt, %143, %16 : vector<16x1xi32>
    %cst_46 = arith.constant 0.000000e+00 : f32
    %145 = vector.shape_cast %144 : vector<16x1xi1> to vector<16x1xi1>
    %146 = vector.broadcast %145 : vector<16x1xi1> to vector<16x16xi1>
    %147 = vector.broadcast %cst_46 : f32 to vector<16x16xf32>
    %148 = arith.select %146, %140, %147 : vector<16x16xi1>, vector<16x16xf32>
    %cst_47 = arith.constant 0.000000e+00 : f32
    %149 = vector.shape_cast %144 : vector<16x1xi1> to vector<16x1xi1>
    %150 = vector.broadcast %149 : vector<16x1xi1> to vector<16x16xi1>
    %151 = vector.broadcast %cst_47 : f32 to vector<16x16xf32>
    %152 = arith.select %150, %138, %151 : vector<16x16xi1>, vector<16x16xf32>
    %cst_48 = arith.constant 0.000000e+00 : f32
    %153 = vector.shape_cast %142 : vector<16x1xi1> to vector<16x1xi1>
    %154 = vector.broadcast %153 : vector<16x1xi1> to vector<16x16xi1>
    %155 = vector.broadcast %cst_48 : f32 to vector<16x16xf32>
    %156 = arith.select %154, %124, %155 : vector<16x16xi1>, vector<16x16xf32>
    %157 = arith.index_cast %c1_i32 : i32 to index
    %c0_49 = arith.constant 0 : index
    %c0_50 = arith.constant 0 : index
    %158 = vector.load %arg9[%157, %c0_49, %c0_50] : memref<4x16x16xf32, #tpu.memory_space<vmem>>, vector<1x16x16xf32>
    %159 = vector.shape_cast %158 : vector<1x16x16xf32> to vector<16x16xf32>
    %160 = vector.shape_cast %156 : vector<16x16xf32> to vector<1x16x16xf32>
    tpu.vector_store %arg9[%157, %c0_49, %c0_50], %160 {strides = array<i32>} : memref<4x16x16xf32, #tpu.memory_space<vmem>>, vector<1x16x16xf32>,
    %161 = arith.index_cast %94 : i32 to index
    %c0_51 = arith.constant 0 : index
    %c0_52 = arith.constant 0 : index
    %162 = vector.load %arg10[%161, %c0_51, %c0_52] : memref<4x16x16xf32, #tpu.memory_space<vmem>>, vector<1x16x16xf32>
    %163 = vector.shape_cast %162 : vector<1x16x16xf32> to vector<16x16xf32>
    %164 = vector.shape_cast %148 : vector<16x16xf32> to vector<1x16x16xf32>
    tpu.vector_store %arg10[%161, %c0_51, %c0_52], %164 {strides = array<i32>} : memref<4x16x16xf32, #tpu.memory_space<vmem>>, vector<1x16x16xf32>,
    %165 = arith.truncf %124 : vector<16x16xf32> to vector<16x16xbf16>
    %166 = arith.truncf %148 : vector<16x16xf32> to vector<16x16xbf16>
    %c2_i32 = arith.constant 2 : i32
    %c3_i32_53 = arith.constant 3 : i32
    %167 = arith.subi %c3_i32_53, %c2_i32 : i32
    %c16_i32_54 = arith.constant 16 : i32
    %168 = arith.muli %c2_i32, %c16_i32_54 : i32
    %169 = tpu.assume_multiple %168, 16 : i32
    %c16_i32_55 = arith.constant 16 : i32
    %170 = arith.muli %167, %c16_i32_55 : i32
    %171 = tpu.assume_multiple %170, 16 : i32
    %172 = arith.index_cast %169 : i32 to index
    %c0_56 = arith.constant 0 : index
    %173 = vector.load %arg11[%172, %c0_56] : memref<64x64xbf16, #tpu.memory_space<vmem>>, vector<16x64xbf16>
    %174 = arith.extf %173 : vector<16x64xbf16> to vector<16x64xf32>
    %175 = arith.index_cast %171 : i32 to index
    %c0_57 = arith.constant 0 : index
    %176 = vector.load %arg12[%175, %c0_57] : memref<64x64xbf16, #tpu.memory_space<vmem>>, vector<16x64xbf16>
    %177 = arith.extf %176 : vector<16x64xbf16> to vector<16x64xf32>
    %cst_58 = arith.constant dense<0.000000e+00> : vector<16x64xf32>
    %178 = tpu.matmul %165, %17, %cst_58 {dimension_numbers = #tpu.dot_dimension_numbers<[1], [0], [0], [1], [0, 0, 1, 1], [], []>} : vector<16x16xbf16>, vector<16x64xbf16>, vector<16x64xf32> -> vector<16x64xf32>
    %179 = arith.addf %174, %178 : vector<16x64xf32>
    %cst_59 = arith.constant dense<0.000000e+00> : vector<16x64xf32>
    %180 = tpu.matmul %166, %18, %cst_59 {dimension_numbers = #tpu.dot_dimension_numbers<[1], [0], [0], [1], [0, 0, 1, 1], [], []>} : vector<16x16xbf16>, vector<16x64xbf16>, vector<16x64xf32> -> vector<16x64xf32>
    %181 = arith.addf %177, %180 : vector<16x64xf32>
    %182 = vector.extract_strided_slice %179 {offsets = [0, 0], sizes = [16, 48], strides = [1, 1]} : vector<16x64xf32> to vector<16x48xf32>
    %183 = arith.negf %182 : vector<16x48xf32>
    %184 = math.exp %183 : vector<16x48xf32>
    %cst_60 = arith.constant 1.000000e+00 : f32
    %185 = vector.broadcast %cst_60 : f32 to vector<16x48xf32>
    %186 = arith.addf %185, %184 : vector<16x48xf32>
    %187 = arith.divf %185, %186 : vector<16x48xf32>
    %188 = vector.extract_strided_slice %179 {offsets = [0, 48], sizes = [16, 16], strides = [1, 1]} : vector<16x64xf32> to vector<16x16xf32>
    %189 = math.tanh %188 : vector<16x16xf32>
    %190 = vector.extract_strided_slice %187 {offsets = [0, 0], sizes = [16, 16], strides = [1, 1]} : vector<16x48xf32> to vector<16x16xf32>
    %191 = vector.extract_strided_slice %187 {offsets = [0, 16], sizes = [16, 16], strides = [1, 1]} : vector<16x48xf32> to vector<16x16xf32>
    %192 = vector.extract_strided_slice %187 {offsets = [0, 32], sizes = [16, 16], strides = [1, 1]} : vector<16x48xf32> to vector<16x16xf32>
    %193 = arith.mulf %191, %122 : vector<16x16xf32>
    %194 = arith.mulf %190, %189 : vector<16x16xf32>
    %195 = arith.addf %193, %194 : vector<16x16xf32>
    %196 = math.tanh %195 : vector<16x16xf32>
    %197 = arith.mulf %192, %196 : vector<16x16xf32>
    %198 = vector.extract_strided_slice %181 {offsets = [0, 0], sizes = [16, 48], strides = [1, 1]} : vector<16x64xf32> to vector<16x48xf32>
    %199 = arith.negf %198 : vector<16x48xf32>
    %200 = math.exp %199 : vector<16x48xf32>
    %cst_61 = arith.constant 1.000000e+00 : f32
    %201 = vector.broadcast %cst_61 : f32 to vector<16x48xf32>
    %202 = arith.addf %201, %200 : vector<16x48xf32>
    %203 = arith.divf %201, %202 : vector<16x48xf32>
    %204 = vector.extract_strided_slice %181 {offsets = [0, 48], sizes = [16, 16], strides = [1, 1]} : vector<16x64xf32> to vector<16x16xf32>
    %205 = math.tanh %204 : vector<16x16xf32>
    %206 = vector.extract_strided_slice %203 {offsets = [0, 0], sizes = [16, 16], strides = [1, 1]} : vector<16x48xf32> to vector<16x16xf32>
    %207 = vector.extract_strided_slice %203 {offsets = [0, 16], sizes = [16, 16], strides = [1, 1]} : vector<16x48xf32> to vector<16x16xf32>
    %208 = vector.extract_strided_slice %203 {offsets = [0, 32], sizes = [16, 16], strides = [1, 1]} : vector<16x48xf32> to vector<16x16xf32>
    %209 = arith.mulf %207, %152 : vector<16x16xf32>
    %210 = arith.mulf %206, %205 : vector<16x16xf32>
    %211 = arith.addf %209, %210 : vector<16x16xf32>
    %212 = math.tanh %211 : vector<16x16xf32>
    %213 = arith.mulf %208, %212 : vector<16x16xf32>
    %214 = vector.broadcast %c2_i32 : i32 to vector<16x1xi32>
    %215 = arith.cmpi slt, %214, %16 : vector<16x1xi32>
    %216 = vector.broadcast %167 : i32 to vector<16x1xi32>
    %217 = arith.cmpi slt, %216, %16 : vector<16x1xi32>
    %cst_62 = arith.constant 0.000000e+00 : f32
    %218 = vector.shape_cast %217 : vector<16x1xi1> to vector<16x1xi1>
    %219 = vector.broadcast %218 : vector<16x1xi1> to vector<16x16xi1>
    %220 = vector.broadcast %cst_62 : f32 to vector<16x16xf32>
    %221 = arith.select %219, %213, %220 : vector<16x16xi1>, vector<16x16xf32>
    %cst_63 = arith.constant 0.000000e+00 : f32
    %222 = vector.shape_cast %217 : vector<16x1xi1> to vector<16x1xi1>
    %223 = vector.broadcast %222 : vector<16x1xi1> to vector<16x16xi1>
    %224 = vector.broadcast %cst_63 : f32 to vector<16x16xf32>
    %225 = arith.select %223, %211, %224 : vector<16x16xi1>, vector<16x16xf32>
    %cst_64 = arith.constant 0.000000e+00 : f32
    %226 = vector.shape_cast %215 : vector<16x1xi1> to vector<16x1xi1>
    %227 = vector.broadcast %226 : vector<16x1xi1> to vector<16x16xi1>
    %228 = vector.broadcast %cst_64 : f32 to vector<16x16xf32>
    %229 = arith.select %227, %197, %228 : vector<16x16xi1>, vector<16x16xf32>
    %230 = arith.index_cast %c2_i32 : i32 to index
    %c0_65 = arith.constant 0 : index
    %c0_66 = arith.constant 0 : index
    %231 = vector.load %arg9[%230, %c0_65, %c0_66] : memref<4x16x16xf32, #tpu.memory_space<vmem>>, vector<1x16x16xf32>
    %232 = vector.shape_cast %231 : vector<1x16x16xf32> to vector<16x16xf32>
    %233 = vector.shape_cast %229 : vector<16x16xf32> to vector<1x16x16xf32>
    tpu.vector_store %arg9[%230, %c0_65, %c0_66], %233 {strides = array<i32>} : memref<4x16x16xf32, #tpu.memory_space<vmem>>, vector<1x16x16xf32>,
    %234 = arith.index_cast %167 : i32 to index
    %c0_67 = arith.constant 0 : index
    %c0_68 = arith.constant 0 : index
    %235 = vector.load %arg10[%234, %c0_67, %c0_68] : memref<4x16x16xf32, #tpu.memory_space<vmem>>, vector<1x16x16xf32>
    %236 = vector.shape_cast %235 : vector<1x16x16xf32> to vector<16x16xf32>
    %237 = vector.shape_cast %221 : vector<16x16xf32> to vector<1x16x16xf32>
    tpu.vector_store %arg10[%234, %c0_67, %c0_68], %237 {strides = array<i32>} : memref<4x16x16xf32, #tpu.memory_space<vmem>>, vector<1x16x16xf32>,
    %238 = arith.truncf %197 : vector<16x16xf32> to vector<16x16xbf16>
    %239 = arith.truncf %221 : vector<16x16xf32> to vector<16x16xbf16>
    %c3_i32_69 = arith.constant 3 : i32
    %c3_i32_70 = arith.constant 3 : i32
    %240 = arith.subi %c3_i32_70, %c3_i32_69 : i32
    %c16_i32_71 = arith.constant 16 : i32
    %241 = arith.muli %c3_i32_69, %c16_i32_71 : i32
    %242 = tpu.assume_multiple %241, 16 : i32
    %c16_i32_72 = arith.constant 16 : i32
    %243 = arith.muli %240, %c16_i32_72 : i32
    %244 = tpu.assume_multiple %243, 16 : i32
    %245 = arith.index_cast %242 : i32 to index
    %c0_73 = arith.constant 0 : index
    %246 = vector.load %arg11[%245, %c0_73] : memref<64x64xbf16, #tpu.memory_space<vmem>>, vector<16x64xbf16>
    %247 = arith.extf %246 : vector<16x64xbf16> to vector<16x64xf32>
    %248 = arith.index_cast %244 : i32 to index
    %c0_74 = arith.constant 0 : index
    %249 = vector.load %arg12[%248, %c0_74] : memref<64x64xbf16, #tpu.memory_space<vmem>>, vector<16x64xbf16>
    %250 = arith.extf %249 : vector<16x64xbf16> to vector<16x64xf32>
    %cst_75 = arith.constant dense<0.000000e+00> : vector<16x64xf32>
    %251 = tpu.matmul %238, %17, %cst_75 {dimension_numbers = #tpu.dot_dimension_numbers<[1], [0], [0], [1], [0, 0, 1, 1], [], []>} : vector<16x16xbf16>, vector<16x64xbf16>, vector<16x64xf32> -> vector<16x64xf32>
    %252 = arith.addf %247, %251 : vector<16x64xf32>
    %cst_76 = arith.constant dense<0.000000e+00> : vector<16x64xf32>
    %253 = tpu.matmul %239, %18, %cst_76 {dimension_numbers = #tpu.dot_dimension_numbers<[1], [0], [0], [1], [0, 0, 1, 1], [], []>} : vector<16x16xbf16>, vector<16x64xbf16>, vector<16x64xf32> -> vector<16x64xf32>
    %254 = arith.addf %250, %253 : vector<16x64xf32>
    %255 = vector.extract_strided_slice %252 {offsets = [0, 0], sizes = [16, 48], strides = [1, 1]} : vector<16x64xf32> to vector<16x48xf32>
    %256 = arith.negf %255 : vector<16x48xf32>
    %257 = math.exp %256 : vector<16x48xf32>
    %cst_77 = arith.constant 1.000000e+00 : f32
    %258 = vector.broadcast %cst_77 : f32 to vector<16x48xf32>
    %259 = arith.addf %258, %257 : vector<16x48xf32>
    %260 = arith.divf %258, %259 : vector<16x48xf32>
    %261 = vector.extract_strided_slice %252 {offsets = [0, 48], sizes = [16, 16], strides = [1, 1]} : vector<16x64xf32> to vector<16x16xf32>
    %262 = math.tanh %261 : vector<16x16xf32>
    %263 = vector.extract_strided_slice %260 {offsets = [0, 0], sizes = [16, 16], strides = [1, 1]} : vector<16x48xf32> to vector<16x16xf32>
    %264 = vector.extract_strided_slice %260 {offsets = [0, 16], sizes = [16, 16], strides = [1, 1]} : vector<16x48xf32> to vector<16x16xf32>
    %265 = vector.extract_strided_slice %260 {offsets = [0, 32], sizes = [16, 16], strides = [1, 1]} : vector<16x48xf32> to vector<16x16xf32>
    %266 = arith.mulf %264, %195 : vector<16x16xf32>
    %267 = arith.mulf %263, %262 : vector<16x16xf32>
    %268 = arith.addf %266, %267 : vector<16x16xf32>
    %269 = math.tanh %268 : vector<16x16xf32>
    %270 = arith.mulf %265, %269 : vector<16x16xf32>
    %271 = vector.extract_strided_slice %254 {offsets = [0, 0], sizes = [16, 48], strides = [1, 1]} : vector<16x64xf32> to vector<16x48xf32>
    %272 = arith.negf %271 : vector<16x48xf32>
    %273 = math.exp %272 : vector<16x48xf32>
    %cst_78 = arith.constant 1.000000e+00 : f32
    %274 = vector.broadcast %cst_78 : f32 to vector<16x48xf32>
    %275 = arith.addf %274, %273 : vector<16x48xf32>
    %276 = arith.divf %274, %275 : vector<16x48xf32>
    %277 = vector.extract_strided_slice %254 {offsets = [0, 48], sizes = [16, 16], strides = [1, 1]} : vector<16x64xf32> to vector<16x16xf32>
    %278 = math.tanh %277 : vector<16x16xf32>
    %279 = vector.extract_strided_slice %276 {offsets = [0, 0], sizes = [16, 16], strides = [1, 1]} : vector<16x48xf32> to vector<16x16xf32>
    %280 = vector.extract_strided_slice %276 {offsets = [0, 16], sizes = [16, 16], strides = [1, 1]} : vector<16x48xf32> to vector<16x16xf32>
    %281 = vector.extract_strided_slice %276 {offsets = [0, 32], sizes = [16, 16], strides = [1, 1]} : vector<16x48xf32> to vector<16x16xf32>
    %282 = arith.mulf %280, %225 : vector<16x16xf32>
    %283 = arith.mulf %279, %278 : vector<16x16xf32>
    %284 = arith.addf %282, %283 : vector<16x16xf32>
    %285 = math.tanh %284 : vector<16x16xf32>
    %286 = arith.mulf %281, %285 : vector<16x16xf32>
    %287 = vector.broadcast %c3_i32_69 : i32 to vector<16x1xi32>
    %288 = arith.cmpi slt, %287, %16 : vector<16x1xi32>
    %289 = vector.broadcast %240 : i32 to vector<16x1xi32>
    %290 = arith.cmpi slt, %289, %16 : vector<16x1xi32>
    %cst_79 = arith.constant 0.000000e+00 : f32
    %291 = vector.shape_cast %290 : vector<16x1xi1> to vector<16x1xi1>
    %292 = vector.broadcast %291 : vector<16x1xi1> to vector<16x16xi1>
    %293 = vector.broadcast %cst_79 : f32 to vector<16x16xf32>
    %294 = arith.select %292, %286, %293 : vector<16x16xi1>, vector<16x16xf32>
    %cst_80 = arith.constant 0.000000e+00 : f32
    %295 = vector.shape_cast %290 : vector<16x1xi1> to vector<16x1xi1>
    %296 = vector.broadcast %295 : vector<16x1xi1> to vector<16x16xi1>
    %297 = vector.broadcast %cst_80 : f32 to vector<16x16xf32>
    %298 = arith.select %296, %284, %297 : vector<16x16xi1>, vector<16x16xf32>
    %cst_81 = arith.constant 0.000000e+00 : f32
    %299 = vector.shape_cast %288 : vector<16x1xi1> to vector<16x1xi1>
    %300 = vector.broadcast %299 : vector<16x1xi1> to vector<16x16xi1>
    %301 = vector.broadcast %cst_81 : f32 to vector<16x16xf32>
    %302 = arith.select %300, %270, %301 : vector<16x16xi1>, vector<16x16xf32>
    %303 = arith.index_cast %c3_i32_69 : i32 to index
    %c0_82 = arith.constant 0 : index
    %c0_83 = arith.constant 0 : index
    %304 = vector.load %arg9[%303, %c0_82, %c0_83] : memref<4x16x16xf32, #tpu.memory_space<vmem>>, vector<1x16x16xf32>
    %305 = vector.shape_cast %304 : vector<1x16x16xf32> to vector<16x16xf32>
    %306 = vector.shape_cast %302 : vector<16x16xf32> to vector<1x16x16xf32>
    tpu.vector_store %arg9[%303, %c0_82, %c0_83], %306 {strides = array<i32>} : memref<4x16x16xf32, #tpu.memory_space<vmem>>, vector<1x16x16xf32>,
    %307 = arith.index_cast %240 : i32 to index
    %c0_84 = arith.constant 0 : index
    %c0_85 = arith.constant 0 : index
    %308 = vector.load %arg10[%307, %c0_84, %c0_85] : memref<4x16x16xf32, #tpu.memory_space<vmem>>, vector<1x16x16xf32>
    %309 = vector.shape_cast %308 : vector<1x16x16xf32> to vector<16x16xf32>
    %310 = vector.shape_cast %294 : vector<16x16xf32> to vector<1x16x16xf32>
    tpu.vector_store %arg10[%307, %c0_84, %c0_85], %310 {strides = array<i32>} : memref<4x16x16xf32, #tpu.memory_space<vmem>>, vector<1x16x16xf32>,
    %311 = arith.truncf %270 : vector<16x16xf32> to vector<16x16xbf16>
    %312 = arith.truncf %294 : vector<16x16xf32> to vector<16x16xbf16>
    %c4_i32 = arith.constant 4 : i32
    return
  }
  func.func @transform_0(%arg0: i32) -> (i32, i32, i32) {
    %c0_i32 = arith.constant 0 : i32
    %c0_i32_0 = arith.constant 0 : i32
    %c0_i32_1 = arith.constant 0 : i32
    return %c0_i32, %arg0, %c0_i32_0 : i32, i32, i32
  }
  func.func @transform_1(%arg0: i32) -> (i32, i32) {
    %c0_i32 = arith.constant 0 : i32
    %c0_i32_0 = arith.constant 0 : i32
    return %arg0, %c0_i32 : i32, i32
  }
  func.func @transform_2(%arg0: i32) -> (i32, i32) {
    %c0_i32 = arith.constant 0 : i32
    %c0_i32_0 = arith.constant 0 : i32
    %c0_i32_1 = arith.constant 0 : i32
    return %c0_i32, %c0_i32_0 : i32, i32
  }
  func.func @transform_3(%arg0: i32) -> (i32, i32) {
    %c0_i32 = arith.constant 0 : i32
    %c0_i32_0 = arith.constant 0 : i32
    %c0_i32_1 = arith.constant 0 : i32
    return %c0_i32, %c0_i32_0 : i32, i32
  }
  func.func @transform_4(%arg0: i32) -> (i32, i32) {
    %c0_i32 = arith.constant 0 : i32
    %c0_i32_0 = arith.constant 0 : i32
    %c0_i32_1 = arith.constant 0 : i32
    return %c0_i32, %c0_i32_0 : i32, i32
  }
  func.func @transform_5(%arg0: i32) -> (i32, i32) {
    %c0_i32 = arith.constant 0 : i32
    %c0_i32_0 = arith.constant 0 : i32
    %c0_i32_1 = arith.constant 0 : i32
    return %c0_i32, %c0_i32_0 : i32, i32
  }
  func.func @transform_6(%arg0: i32) -> (i32, i32) {
    %c0_i32 = arith.constant 0 : i32
    %c0_i32_0 = arith.constant 0 : i32
    %c0_i32_1 = arith.constant 0 : i32
    return %c0_i32, %c0_i32_0 : i32, i32
  }
  func.func @transform_7(%arg0: i32) -> (i32, i32) {
    %c0_i32 = arith.constant 0 : i32
    %c0_i32_0 = arith.constant 0 : i32
    %c0_i32_1 = arith.constant 0 : i32
    return %c0_i32, %c0_i32_0 : i32, i32
  }
  func.func @transform_8(%arg0: i32) -> (i32, i32, i32) {
    %c0_i32 = arith.constant 0 : i32
    %c0_i32_0 = arith.constant 0 : i32
    %c0_i32_1 = arith.constant 0 : i32
    return %c0_i32, %arg0, %c0_i32_0 : i32, i32, i32
  }
  func.func @transform_9(%arg0: i32) -> (i32, i32, i32) {
    %c0_i32 = arith.constant 0 : i32
    %c0_i32_0 = arith.constant 0 : i32
    %c0_i32_1 = arith.constant 0 : i32
    return %c0_i32, %arg0, %c0_i32_0 : i32, i32, i32
  }
}

</mosaic_0001>

<bundles_post_ra>
// kernel: tpu_custom_call.1
= control target key start
LH: loop header
LB: loop body
LE: loop exit
PB: predicated region body
PF: predicated region fallthrough
CT: control target
= control target key end

     0   :  { %15 = vsyncpa [#allocation5], 0  ;;  %s2178_s0 = inlined_call_operand.hbm [shape: bf16[4,16,32], index: 0, kind: input, shape index: {}]   ;;  %s2179_s1 = inlined_call_operand.vmem [shape: s32[16,1], index: 1, kind: input, shape index: {}]   ;;  %s2180_s2 = inlined_call_operand.vmem [shape: bf16[32,64], index: 2, kind: input, shape index: {}]   ;;  %s2181_s3 = inlined_call_operand.hbm [shape: bf16[32,64], index: 3, kind: input, shape index: {}]   ;;  %s2182_s4 = inlined_call_operand.vmem [shape: bf16[16,64], index: 4, kind: input, shape index: {}]   ;;  %s2183_s5 = inlined_call_operand.vmem [shape: bf16[16,64], index: 5, kind: input, shape index: {}]   ;;  %s2184_s6 = inlined_call_operand.vmem [shape: f32[1,64], index: 6, kind: input, shape index: {}]   ;;  %s2185_s7 = inlined_call_operand.vmem [shape: f32[1,64], index: 7, kind: input, shape index: {}]   ;;  %s2186_s8 = inlined_call_operand.hbm [shape: f32[4,16,16], index: 8, kind: output, shape index: {0}]   ;;  %s2187_s9 = inlined_call_operand.hbm [shape: f32[4,16,16], index: 9, kind: output, shape index: {1}]  }
   0x1   :  { %16 = vsyncpa [#allocation8], 0 }
   0x2   :  { %17 = vsyncpa [#allocation6], 0 }
   0x3   :  { %18 = vsyncpa [#allocation11], 0  ;;  %s1700_s30 = smov [#allocation4]   ;;  %s1604_s13 = scalar_lea.hbm %s2178_s0, 512 }
   0x4   :  { %s24_s10 = sshll.u32 %s1700_s30, 4  ;;  %p1605_p0 = scmp.ne.s32.totalorder %s2178_s0, %s1604_s13  ;;  %s25_s10 = int_to_ptr.vmem [resolvable:$true] %s24_s10 }
   0x5   :  { %p1608_p1 = scmp.lt.u32.totalorder %s1604_s13, %s2178_s0 }
   0x7   :  { %p1610_p2 = pnand %p1608_p1, %p1605_p0 }
   0x9   :  { %1613 = shalt.err (!%p1610_p2)
}
   0xa   :  { %s1614_s18 = scalar_lea.vmem %s25_s10, 512  ;;  %p1619_p4 = scmp.lt.s32.totalorder %s25_s10, %s25_s10 }
   0xb   :  { %p1615_p3 = scmp.ne.s32.totalorder %s25_s10, %s1614_s18  ;;  %p1620_p5 = scmp.lt.s32.totalorder %s1614_s18, %s1614_s18 }
   0xd   :  { %p1621_p6 = por %p1620_p5, %p1619_p4 }
   0xf   :  { %p1622_p7 = pnand %p1621_p6, %p1615_p3 }
  0x11   :  { %1625 = shalt.err (!%p1622_p7)
}
  0x12   :  { %s1701_s19 = smov 64   ;;  %s1702_s20 = smov 4  }
  0x13   :  { %30 = dma.hbm_to_vmem [thread:$0]  %s2178_s0, 512, %s25_s10, [#allocation5], %s1701_s19, %s1701_s19, %s1702_s20  }
  0x14   :  { %s1703_s23 = smov [#allocation7]   ;;  %s1626_s27 = scalar_lea.hbm %s2181_s3, 256 }
  0x15   :  { %s40_s24 = sshll.u32 %s1703_s23, 4  ;;  %p1627_p8 = scmp.ne.s32.totalorder %s2181_s3, %s1626_s27  ;;  %s41_s24 = int_to_ptr.vmem [resolvable:$true] %s40_s24 }
  0x16   :  { %p1630_p9 = scmp.lt.u32.totalorder %s1626_s27, %s2181_s3 }
  0x18   :  { %p1632_p10 = pnand %p1630_p9, %p1627_p8 }
  0x1a   :  { %1635 = shalt.err (!%p1632_p10)
}
  0x1b   :  { %s1636_s12 = scalar_lea.vmem %s41_s24, 256  ;;  %p1641_p12 = scmp.lt.s32.totalorder %s41_s24, %s41_s24 }
  0x1c   :  { %p1637_p11 = scmp.ne.s32.totalorder %s41_s24, %s1636_s12  ;;  %p1642_p13 = scmp.lt.s32.totalorder %s1636_s12, %s1636_s12 }
  0x1e   :  { %p1643_p0 = por %p1642_p13, %p1641_p12 }
  0x20   :  { %p1644_p1 = pnand %p1643_p0, %p1637_p11 }
  0x22   :  { %1647 = shalt.err (!%p1644_p1)
}
  0x23   :  { %46 = dma.hbm_to_vmem [thread:$0]  %s2181_s3, 256, %s41_s24, [#allocation8], %s1701_s19, %s1701_s19, %s1702_s20  }
  0x24   :  { %1692 = dma.done.wait [#allocation5], 512  }
  0x25   :  { %1693 = vsyncadd [#allocation5], 4294966784 }
  0x26   :  { %1694 = dma.done.wait [#allocation8], 256  }
  0x27   :  { %1695 = vsyncadd [#allocation8], 4294967040  ;;  %v1704_v0 = vmov 0   ;;  %v1466_v1 = vld [vmem:[%s2180_s2] sm:$0xff]   ;;  %v1468_v3 = vld [vmem:[%s2180_s2 + $0x8] sm:$0xff]   ;;  %vm113_vm0 = vcmask 261120  }
  0x28   :  { %1464 = vset.pattern.permute.xlu0 %v1704_v0  ;;  %1465 = vset.pattern.permute.xlu1 %v1704_v0  ;;  %v1467_v2 = vld [vmem:[#allocation7] sm:$0xff]   ;;  %v1469_v4 = vld [vmem:[#allocation7 + $0x8] sm:$0xff]   ;;  %v1472_v7 = vld [vmem:[#allocation4 + $0x10] sm:$0xff]   ;;  %v1705_v9 = vmov 0.0   ;;  %vm1706_vm1 = vmmov 0   ;;  %vm195_vm2 = vcmask 523264  }
  0x29   :  { %1378 = vmatprep.subr.bf16.mxu0 %v1466_v1  ;;  %1390 = vmatprep.subr.bf16.mxu1 %v1467_v2  ;;  %v1470_v5 = vld [vmem:[#allocation4] sm:$0xff]   ;;  %v1471_v6 = vld [vmem:[#allocation4 + $0x8] sm:$0xff]   ;;  %v1473_v11 = vld [vmem:[#allocation4 + $0x18] sm:$0xff]   ;;  %s1708_s22 = smov 16   ;;  %vm315_vm7 = vcmask 130048   ;;  %s1710_s25 = smov [#allocation9]  }
  0x2a   :  { %1379 = vmatpush3.bf16.msra.mxu0 %v1466_v1  ;;  %1391 = vmatpush3.bf16.msra.mxu1 %v1467_v2  ;;  %v1801_v8 = vld [vmem:[%s2183_s5] sm:$0xff]   ;;  %s1279_s26 = sshll.u32 %s1710_s25, 4  ;;  %s1711_s27 = smov [#allocation10]   ;;  %s1280_s26 = int_to_ptr.vmem [resolvable:$true] %s1279_s26 }
  0x2b   :  { %1380 = vmatprep.subr.bf16.mxu0 %v1468_v3  ;;  %1392 = vmatprep.subr.bf16.mxu1 %v1469_v4  ;;  %v1808_v10 = vld [vmem:[%s2182_s4] sm:$0xff]   ;;  %s1291_s28 = sshll.u32 %s1711_s27, 4  ;;  %s1648_s29 = scalar_lea.vmem %s1280_s26, 1024  ;;  %s1292_s28 = int_to_ptr.vmem [resolvable:$true] %s1291_s28 }
  0x2c   :  { %1382 = vmatprep.mubr.msk.bf16.mxu0 %vm113_vm0, %v1470_v5  ;;  %1394 = vmatprep.mubr.msk.bf16.mxu1 %vm113_vm0, %v1470_v5  ;;  %v1308_v12 = vld [vmem:[%s2184_s6] ss:$0 sm:$0xff]  ;;  %s1707_s6 = smov 80   ;;  %p1649_p2 = scmp.ne.s32.totalorder %s1280_s26, %s1648_s29 }
  0x2d   :  { %v1319_v16 = vld [vmem:[%s2185_s7] ss:$0 sm:$0xff]  ;;  %p1653_p3 = scmp.lt.s32.totalorder %s1280_s26, %s1280_s26  ;;  %p1654_p4 = scmp.lt.s32.totalorder %s1648_s29, %s1648_s29 }
  0x2e   :  { %1381 = vmatpush3.bf16.msra.mxu0 %v1468_v3  ;;  %1393 = vmatpush3.bf16.msra.mxu1 %v1469_v4 }
  0x2f   :  { %1402 = vmatprep.subr.bf16.mxu0 %v1705_v9  ;;  %1408 = vmatprep.subr.bf16.mxu1 %v1705_v9  ;;  %p1655_p5 = por %p1654_p4, %p1653_p3 }
  0x31   :  { %1383 = vmatmul.mubr.msk.bf16.vlgmr.msra.gmra.mrb[0].mxu0 %vm113_vm0, %v1471_v6  ;;  %1395 = vmatmul.mubr.msk.bf16.vlgmr.msra.gmra.mrb[0].mxu1 %vm113_vm0, %v1471_v6  ;;  %p1656_p6 = pnand %p1655_p5, %p1649_p2 }
  0x32   :  { %1386 = vmatprep.mubr.msk.bf16.mxu0 %vm113_vm0, %v1472_v7  ;;  %1398 = vmatprep.mubr.msk.bf16.mxu1 %vm113_vm0, %v1472_v7 }
  0x33   :  { %1409 = vmatpush3.bf16.msra.mxu1 %v1801_v8  ;;  %1403 = vmatpush3.bf16.msra.mxu0 %v1808_v10 }
  0x34   :  { %1420 = vmatprep.subr.bf16.mxu1 %v1705_v9  ;;  %1414 = vmatprep.subr.bf16.mxu0 %v1705_v9 }
  0x39   :  { %1387 = vmatmul.mubr.msk.bf16.gmra.mrb[4].mxu0 %vm113_vm0, %v1473_v11  ;;  %1399 = vmatmul.mubr.msk.bf16.gmra.mrb[4].mxu1 %vm113_vm0, %v1473_v11 }
  0x3a   :  { %1404 = vmatprep.mubr.msk.bf16.mxu0 %vm1706_vm1, %v1705_v9  ;;  %1410 = vmatprep.mubr.msk.bf16.mxu1 %vm1706_vm1, %v1705_v9 }
  0x41   :  { %1405 = vmatmul.mubr.bf16.vlgmr.msra.gmra.mrb[8].mxu0 %v1704_v0  ;;  %1411 = vmatmul.mubr.bf16.vlgmr.msra.gmra.mrb[8].mxu1 %v1704_v0 }
  0x42   :  { %1415 = vmatpush3.bf16.msra.mxu0 %v1808_v10  ;;  %1421 = vmatpush3.bf16.msra.mxu1 %v1801_v8 }
  0x43   :  { %1422 = vmatprep.mubr.msk.bf16.mxu1 %vm1706_vm1, %v1705_v9  ;;  %1416 = vmatprep.mubr.msk.bf16.mxu0 %vm1706_vm1, %v1705_v9 }
  0x44   :  { %1432 = vmatprep.subr.bf16.mxu1 %v1705_v9  ;;  %1426 = vmatprep.subr.bf16.mxu0 %v1705_v9 }
 0x104   :  { %v1384_v13 = vpop.f32.mrb[0].mxu0  ;;  %v1396_v15 = vpop.f32.mrb[0].mxu1 }
 0x105   :  { %v169_v14 = vadd.f32 %v1384_v13, %v1308_v12  ;;  %v160_v17 = vpop.f32.mrb[1].mxu0  ;;  %v257_v19 = vpop.f32.mrb[1].mxu1  ;;  %v266_v24 = vadd.f32 %v1396_v15, %v1319_v16 }
 0x106   :  { %v161_v18 = vadd.f32 %v1308_v12, %v160_v17  ;;  %v1385_v20 = vpop.f32.mrb[2].mxu0  ;;  %v1397_v22 = vpop.f32.mrb[2].mxu1  ;;  %v258_v28 = vadd.f32 %v1319_v16, %v257_v19 }
 0x107   :  { %v172_v21 = vadd.f32 %v1385_v20, %v1308_v12  ;;  %v163_v23 = vpop.f32.mrb[3].mxu0  ;;  %v269_v25 = vadd.f32 %v1397_v22, %v1319_v16  ;;  %v260_v27 = vpop.f32.mrb[3].mxu1 }
 0x108   :  { %v164_v26 = vadd.f32 %v1308_v12, %v163_v23  ;;  %v261_v30 = vadd.f32 %v1319_v16, %v260_v27 }
 0x109   :  { %v192_v29 = vpack.c.bf16 %v172_v21, %v169_v14  ;;  %v289_v31 = vpack.c.bf16 %v269_v25, %v266_v24 }
 0x10a   :  { %v191_v32 = vpack.c.bf16 %v164_v26, %v161_v18  ;;  %v288_v33 = vpack.c.bf16 %v261_v30, %v258_v28 }
 0x10b   :  { %197 = vst.msk [vmem:[#allocation2 + $0x8] sm:$0xff] %vm195_vm2, %v192_v29  ;;  %293 = vst.msk [vmem:[#allocation3 + $0x8] sm:$0xff] %vm195_vm2, %v289_v31 }
 0x10c   :  { %196 = vst.msk [vmem:[#allocation2] sm:$0xff] %vm195_vm2, %v191_v32  ;;  %v1388_v34 = vpop.f32.mrb[4].mxu0  ;;  %292 = vst.msk [vmem:[#allocation3] sm:$0xff] %vm195_vm2, %v288_v33  ;;  %v1400_v35 = vpop.f32.mrb[4].mxu1  ;;  %v1855_v32 = vld [vmem:[%s2179_s1] sm:$0xff] }
 0x10d   :  { %v185_v36 = vadd.f32 %v1388_v34, %v1308_v12  ;;  %v176_v37 = vpop.f32.mrb[5].mxu0  ;;  %v273_v38 = vpop.f32.mrb[5].mxu1  ;;  %v282_v44 = vadd.f32 %v1400_v35, %v1319_v16  ;;  %vm509_vm3 = vcmp.gt.s32.totalorder %v1855_v32, 3  ;;  %vm764_vm8 = vcmp.gt.s32.totalorder %v1855_v32, 2 }
 0x10e   :  { %v177_v39 = vadd.f32 %v1308_v12, %v176_v37  ;;  %v1389_v40 = vpop.f32.mrb[6].mxu0  ;;  %v1401_v41 = vpop.f32.mrb[6].mxu1  ;;  %v274_v48 = vadd.f32 %v1319_v16, %v273_v38  ;;  %vm762_vm12 = vcmp.gt.s32.totalorder %v1855_v32, 1  ;;  %vm507_vm0 = vcmp.gt.s32.totalorder %v1855_v32, 0 }
 0x10f   :  { %v188_v42 = vadd.f32 %v1389_v40, %v1308_v12  ;;  %v179_v43 = vpop.f32.mrb[7].mxu0  ;;  %v285_v45 = vadd.f32 %v1401_v41, %v1319_v16  ;;  %v276_v46 = vpop.f32.mrb[7].mxu1  ;;  %v511_v41 = vsel %vm509_vm3, 1, %v1704_v0 }
 0x110   :  { %v180_v47 = vadd.f32 %v1308_v12, %v179_v43  ;;  %v277_v49 = vadd.f32 %v1319_v16, %v276_v46 }
 0x111   :  { %v194_v50 = vpack.c.bf16 %v188_v42, %v185_v36  ;;  %v291_v51 = vpack.c.bf16 %v285_v45, %v282_v44 }
 0x112   :  { %v193_v52 = vpack.c.bf16 %v180_v47, %v177_v39  ;;  %v290_v53 = vpack.c.bf16 %v277_v49, %v274_v48  ;;  %v1862_v39 = vld [vmem:[%s2179_s1 + $0x8] sm:$0xff]  ;;  %s1709_s1 = smov 96  }
 0x113   :  { %199 = vst.msk [vmem:[#allocation2 + $0x18] sm:$0xff] %vm195_vm2, %v194_v50  ;;  %v302_v54 = vld [vmem:[#allocation2] sm:$0xff]  ;;  %295 = vst.msk [vmem:[#allocation3 + $0x18] sm:$0xff] %vm195_vm2, %v291_v51  ;;  %vm510_vm4 = vcmp.gt.s32.totalorder %v1862_v39, 3  ;;  %vm765_vm9 = vcmp.gt.s32.totalorder %v1862_v39, 2  ;;  %vm763_vm13 = vcmp.gt.s32.totalorder %v1862_v39, 1 }
 0x114   :  { %198 = vst.msk [vmem:[#allocation2 + $0x10] sm:$0xff] %vm195_vm2, %v193_v52  ;;  %v303_v55 = vunpack.c.l.bf16 %v302_v54  ;;  %v353_v56 = vpop.f32.mrb[8].mxu0  ;;  %v304_v57 = vunpack.c.h.bf16 %v302_v54  ;;  %294 = vst.msk [vmem:[#allocation3 + $0x10] sm:$0xff] %vm195_vm2, %v290_v53  ;;  %v402_v59 = vpop.f32.mrb[8].mxu1  ;;  %v512_v43 = vsel %vm510_vm4, 1, %v1704_v0 }
 0x115   :  { %v1406_v58 = vpop.f32.mrb[9].mxu0  ;;  %v1412_v62 = vpop.f32.mrb[9].mxu1 }
 0x116   :  { %v360_v60 = vadd.f32 %v353_v56, %v303_v55  ;;  %v356_v61 = vpop.f32.mrb[10].mxu0  ;;  %v405_v1 = vpop.f32.mrb[10].mxu1 }
 0x117   :  { %v361_v63 = vadd.f32 %v356_v61, %v304_v57  ;;  %v1407_v2 = vpop.f32.mrb[11].mxu0  ;;  %v1413_v3 = vpop.f32.mrb[11].mxu1 }
 0x118   :  { %1476 = vtanh.f32 %v360_v60  ;;  %v1328_v17 = vmul.f32 -1.442695, %v360_v60 }
 0x119   :  { %1478 = vtanh.f32 %v361_v63  ;;  %v1329_v19 = vmul.f32 -1.442695, %v361_v63 }
 0x11a   :  { %v306_v4 = vld [vmem:[#allocation3 + $0x18] sm:$0xff] }
 0x11b   :  { %v307_v5 = vunpack.c.l.bf16 %v306_v4  ;;  %v308_v6 = vunpack.c.h.bf16 %v306_v4 }
 0x11d   :  { %v409_v7 = vadd.f32 %v402_v59, %v307_v5  ;;  %v410_v11 = vadd.f32 %v405_v1, %v308_v6 }
 0x11f   :  { %1480 = vtanh.f32 %v409_v7  ;;  %v1330_v16 = vmul.f32 -1.442695, %v409_v7  ;;  %v1331_v18 = vmul.f32 -1.442695, %v410_v11 }
 0x120   :  { %1482 = vtanh.f32 %v410_v11 }
 0x121   :  { %1484 = vpow2.f32 %v1330_v16  ;;  %v565_v16 = vld [vmem:[#allocation3 + $0x10] sm:$0xff] }
 0x122   :  { %v1477_v12 = vpop.eup %1476  ;;  %1486 = vpow2.f32 %v1328_v17  ;;  %v566_v17 = vunpack.c.l.bf16 %v565_v16 }
 0x123   :  { %429 = vrot.lane.b32.xlu1 %v1477_v12, %s1707_s6  ;;  %v1479_v13 = vpop.eup %1478  ;;  %1488 = vpow2.f32 %v1331_v18 }
 0x124   :  { %1490 = vpow2.f32 %v1329_v19  ;;  %v561_v19 = vld [vmem:[#allocation2 + $0x8] sm:$0xff] }
 0x127   :  { %431 = vrot.lane.b32.xlu1 %v1479_v13, %s1707_s6 }
 0x129   :  { %v1481_v14 = vpop.eup %1480 }
 0x12a   :  { %477 = vrot.lane.b32.xlu0 %v1481_v14, %s1707_s6  ;;  %v1483_v15 = vpop.eup %1482 }
 0x12b   :  { %v1485_v20 = vpop.eup %1484 }
 0x12c   :  { %v1487_v21 = vpop.eup %1486  ;;  %v465_v22 = vadd.f32 1.0, %v1485_v20 }
 0x12d   :  { %v1489_v23 = vpop.eup %1488  ;;  %v417_v24 = vadd.f32 1.0, %v1487_v21 }
 0x12e   :  { %479 = vrot.lane.b32.xlu0 %v1483_v15, %s1707_s6  ;;  %1492 = vrcp.f32 %v465_v22  ;;  %v466_v25 = vadd.f32 1.0, %v1489_v23  ;;  %v1491_v26 = vpop.eup %1490  ;;  %v567_v22 = vunpack.c.h.bf16 %v565_v16 }
 0x12f   :  { %1494 = vrcp.f32 %v417_v24  ;;  %v418_v27 = vadd.f32 1.0, %v1491_v26 }
 0x130   :  { %1496 = vrcp.f32 %v466_v25  ;;  %v562_v25 = vunpack.c.l.bf16 %v561_v19 }
 0x131   :  { %1498 = vrcp.f32 %v418_v27 }
 0x138   :  { %v1493_v28 = vpop.eup %1492 }
 0x139   :  { %v1495_v33 = vpop.eup %1494  ;;  %v473_v44 = vmul.f32 0.0, %v1493_v28 }
 0x13a   :  { %v1497_v34 = vpop.eup %1496  ;;  %v425_v48 = vmul.f32 0.0, %v1495_v33 }
 0x13b   :  { %v1499_v40 = vpop.eup %1498  ;;  %v474_v47 = vmul.f32 0.0, %v1497_v34 }
 0x13c   :  { %v426_v53 = vmul.f32 0.0, %v1499_v40 }
 0x195   :  { %v430_v29 = vpop.permute.xlu1 %429 }
 0x196   :  { %v435_v36 = vmul.f32 %v1495_v33, %v430_v29 }
 0x199   :  { %v432_v38 = vpop.permute.xlu1 %431 }
 0x19a   :  { %v436_v42 = vmul.f32 %v1499_v40, %v432_v38 }
 0x19c   :  { %v478_v30 = vpop.permute.xlu0 %477 }
 0x19d   :  { %v483_v31 = vmul.f32 %v1493_v28, %v478_v30  ;;  %v563_v30 = vunpack.c.h.bf16 %v561_v19 }
 0x19f   :  { %487 = vrot.lane.b32.xlu0 %v483_v31, %s1708_s22 }
 0x1a0   :  { %v480_v35 = vpop.permute.xlu0 %479 }
 0x1a1   :  { %v484_v37 = vmul.f32 %v1497_v34, %v480_v35 }
 0x1a3   :  { %489 = vrot.lane.b32.xlu1 %v484_v37, %s1708_s22  ;;  %439 = vrot.lane.b32.xlu0 %v435_v36, %s1708_s22 }
 0x1a7   :  { %441 = vrot.lane.b32.xlu1 %v436_v42, %s1708_s22  ;;  %514 = vperm.xlu0 %1464, %v511_v41  }
 0x1ab   :  { %517 = vperm.xlu1 %1465, %v512_v43  }
 0x211   :  { %v488_v45 = vpop.permute.xlu0 %487 }
 0x212   :  { %v1870_v46 = vadd.f32 %v488_v45, %v473_v44 }
 0x214   :  { %1500 = vtanh.f32 %v1870_v46 }
 0x215   :  { %v490_v49 = vpop.permute.xlu1 %489  ;;  %v440_v50 = vpop.permute.xlu0 %439 }
 0x216   :  { %v1873_v51 = vadd.f32 %v490_v49, %v474_v47  ;;  %v1875_v52 = vadd.f32 %v440_v50, %v425_v48 }
 0x218   :  { %1502 = vtanh.f32 %v1873_v51 }
 0x219   :  { %1504 = vtanh.f32 %v1875_v52  ;;  %v442_v54 = vpop.permute.xlu1 %441 }
 0x21a   :  { %v1879_v55 = vadd.f32 %v442_v54, %v426_v53 }
 0x21c   :  { %1506 = vtanh.f32 %v1879_v55 }
 0x21e   :  { %v1501_v56 = vpop.eup %1500 }
 0x21f   :  { %499 = vrot.lane.b32.xlu1 %v1501_v56, %s1708_s22 }
 0x222   :  { %v1503_v57 = vpop.eup %1502 }
 0x223   :  { %v1505_v58 = vpop.eup %1504  ;;  %501 = vrot.lane.b32.xlu0 %v1503_v57, %s1708_s22 }
 0x224   :  { %451 = vrot.lane.b32.xlu1 %v1505_v58, %s1708_s22 }
 0x226   :  { %v1507_v59 = vpop.eup %1506  ;;  %v1888_v61 = vpop.permute.xlu0 %514 }
 0x227   :  { %453 = vrot.lane.b32.xlu0 %v1507_v59, %s1708_s22  ;;  %vm519_vm5 = vcmp.eq.s32.totalorder %v1888_v61, 1 }
 0x228   :  { %v523_v16 = vsel %vm519_vm5, %v1870_v46, 0.0 }
 0x22a   :  { %v1886_v60 = vpop.permute.xlu1 %517 }
 0x22b   :  { %vm520_vm6 = vcmp.eq.s32.totalorder %v1886_v60, 1 }
 0x22c   :  { %v524_v19 = vsel %vm520_vm6, %v1873_v51, 0.0 }
 0x291   :  { %v500_v62 = vpop.permute.xlu1 %499 }
 0x292   :  { %v505_v63 = vmul.f32 %v1493_v28, %v500_v62 }
 0x294   :  { %v1894_v4 = vsel %vm519_vm5, %v505_v63, 0.0 }
 0x295   :  { %v502_v1 = vpop.permute.xlu0 %501 }
 0x296   :  { %v506_v2 = vmul.f32 %v1497_v34, %v502_v1  ;;  %v452_v3 = vpop.permute.xlu1 %451 }
 0x297   :  { %v1902_v11 = vmul.f32 %v1495_v33, %v452_v3 }
 0x298   :  { %v1898_v5 = vsel %vm520_vm6, %v506_v2, 0.0 }
 0x299   :  { %v559_v6 = vpack.c.bf16 %v1898_v5, %v1894_v4  ;;  %v454_v7 = vpop.permute.xlu0 %453 }
 0x29a   :  { %v1904_v12 = vmul.f32 %v1499_v40, %v454_v7 }
 0x29b   :  { %618 = vrot.lane.b32.xlu1 %v559_v6, %s1709_s1 }
 0x29c   :  { %v558_v13 = vpack.c.bf16 %v1904_v12, %v1902_v11 }
 0x29e   :  { %569 = vrot.lane.b32.xlu0 %v558_v13, %s1709_s1 }
 0x30d   :  { %v619_v14 = vpop.permute.xlu1 %618 }
 0x30e   :  { %1423 = vmatmul.mubr.msk.bf16.vlgmr.msra.gmra.mrb[12].mxu1 %vm315_vm7, %v619_v14  ;;  %v766_v14 = vsel %vm764_vm8, 1, %v1704_v0 }
 0x30f   :  { %1433 = vmatpush3.bf16.msra.mxu1 %v1801_v8  ;;  %1434 = vmatprep.mubr.msk.bf16.mxu1 %vm1706_vm1, %v1705_v9 }
 0x310   :  { %v570_v15 = vpop.permute.xlu0 %569  ;;  %1444 = vmatprep.subr.bf16.mxu1 %v1705_v9 }
 0x311   :  { %1417 = vmatmul.mubr.msk.bf16.vlgmr.msra.gmra.mrb[12].mxu0 %vm315_vm7, %v570_v15  ;;  %v767_v15 = vsel %vm765_vm9, 1, %v1704_v0 }
 0x312   :  { %1427 = vmatpush3.bf16.msra.mxu0 %v1808_v10  ;;  %1428 = vmatprep.mubr.msk.bf16.mxu0 %vm1706_vm1, %v1705_v9 }
 0x313   :  { %1438 = vmatprep.subr.bf16.mxu0 %v1705_v9 }
 0x3e1   :  { %v657_v18 = vpop.f32.mrb[12].mxu1 }
 0x3e2   :  { %v664_v20 = vadd.f32 %v657_v18, %v566_v17  ;;  %v1424_v21 = vpop.f32.mrb[13].mxu1 }
 0x3e3   :  { %v660_v23 = vpop.f32.mrb[14].mxu1 }
 0x3e4   :  { %1508 = vtanh.f32 %v664_v20  ;;  %v665_v24 = vadd.f32 %v660_v23, %v567_v22  ;;  %v608_v26 = vpop.f32.mrb[12].mxu0  ;;  %v1425_v27 = vpop.f32.mrb[15].mxu1  ;;  %v1336_v40 = vmul.f32 -1.442695, %v664_v20 }
 0x3e5   :  { %v1418_v28 = vpop.f32.mrb[13].mxu0  ;;  %v615_v29 = vadd.f32 %v608_v26, %v562_v25 }
 0x3e6   :  { %v611_v31 = vpop.f32.mrb[14].mxu0  ;;  %1510 = vtanh.f32 %v665_v24  ;;  %v1337_v41 = vmul.f32 -1.442695, %v665_v24 }
 0x3e7   :  { %v1419_v33 = vpop.f32.mrb[15].mxu0  ;;  %v616_v34 = vadd.f32 %v611_v31, %v563_v30  ;;  %1512 = vtanh.f32 %v615_v29  ;;  %v1334_v42 = vmul.f32 -1.442695, %v615_v29 }
 0x3e9   :  { %1514 = vtanh.f32 %v616_v34  ;;  %v1335_v43 = vmul.f32 -1.442695, %v616_v34 }
 0x3ea   :  { %1516 = vpow2.f32 %v1336_v40 }
 0x3eb   :  { %1518 = vpow2.f32 %v1337_v41 }
 0x3ec   :  { %1520 = vpow2.f32 %v1334_v42 }
 0x3ed   :  { %1522 = vpow2.f32 %v1335_v43 }
 0x3ee   :  { %v1509_v35 = vpop.eup %1508 }
 0x3ef   :  { %732 = vrot.lane.b32.xlu1 %v1509_v35, %s1707_s6 }
 0x3f0   :  { %v1511_v36 = vpop.eup %1510 }
 0x3f1   :  { %734 = vrot.lane.b32.xlu0 %v1511_v36, %s1707_s6  ;;  %v1513_v37 = vpop.eup %1512 }
 0x3f3   :  { %684 = vrot.lane.b32.xlu1 %v1513_v37, %s1707_s6  ;;  %v1515_v38 = vpop.eup %1514 }
 0x3f4   :  { %v1517_v44 = vpop.eup %1516 }
 0x3f5   :  { %686 = vrot.lane.b32.xlu0 %v1515_v38, %s1707_s6  ;;  %v1519_v45 = vpop.eup %1518  ;;  %v720_v47 = vadd.f32 1.0, %v1517_v44 }
 0x3f6   :  { %v1521_v48 = vpop.eup %1520  ;;  %v721_v49 = vadd.f32 1.0, %v1519_v45 }
 0x3f7   :  { %1524 = vrcp.f32 %v720_v47  ;;  %v1523_v50 = vpop.eup %1522  ;;  %v672_v53 = vadd.f32 1.0, %v1521_v48 }
 0x3f8   :  { %1526 = vrcp.f32 %v721_v49  ;;  %v673_v54 = vadd.f32 1.0, %v1523_v50  ;;  %v821_v49 = vld [vmem:[#allocation3 + $0x8] sm:$0xff] }
 0x3f9   :  { %1528 = vrcp.f32 %v672_v53  ;;  %v822_v50 = vunpack.c.l.bf16 %v821_v49 }
 0x3fa   :  { %1530 = vrcp.f32 %v673_v54  ;;  %v817_v54 = vld [vmem:[#allocation2 + $0x10] sm:$0xff] }
 0x401   :  { %v1525_v56 = vpop.eup %1524 }
 0x402   :  { %v1527_v59 = vpop.eup %1526  ;;  %v728_v17 = vmul.f32 %v1525_v56, %v523_v16 }
 0x403   :  { %v1529_v1 = vpop.eup %1528  ;;  %v729_v21 = vmul.f32 %v1527_v59, %v524_v19 }
 0x404   :  { %v1531_v6 = vpop.eup %1530  ;;  %v680_v24 = vmul.f32 %v1529_v1, %v1875_v52 }
 0x405   :  { %v681_v26 = vmul.f32 %v1531_v6, %v1879_v55 }
 0x461   :  { %v733_v57 = vpop.permute.xlu1 %732 }
 0x462   :  { %v738_v58 = vmul.f32 %v1525_v56, %v733_v57 }
 0x463   :  { %v735_v62 = vpop.permute.xlu0 %734 }
 0x464   :  { %742 = vrot.lane.b32.xlu1 %v738_v58, %s1708_s22  ;;  %v739_v63 = vmul.f32 %v1527_v59, %v735_v62  ;;  %v823_v58 = vunpack.c.h.bf16 %v821_v49  ;;  %v818_v62 = vunpack.c.l.bf16 %v817_v54 }
 0x465   :  { %v685_v2 = vpop.permute.xlu1 %684 }
 0x466   :  { %744 = vrot.lane.b32.xlu0 %v739_v63, %s1708_s22  ;;  %v690_v3 = vmul.f32 %v1529_v1, %v685_v2 }
 0x467   :  { %v687_v7 = vpop.permute.xlu0 %686 }
 0x468   :  { %v691_v13 = vmul.f32 %v1531_v6, %v687_v7  ;;  %694 = vrot.lane.b32.xlu1 %v690_v3, %s1708_s22 }
 0x46a   :  { %696 = vrot.lane.b32.xlu0 %v691_v13, %s1708_s22 }
 0x46c   :  { %769 = vperm.xlu1 %1465, %v766_v14  }
 0x46e   :  { %772 = vperm.xlu0 %1464, %v767_v15  }
 0x4d6   :  { %v743_v18 = vpop.permute.xlu1 %742 }
 0x4d7   :  { %v1938_v20 = vadd.f32 %v743_v18, %v728_v17 }
 0x4d8   :  { %v745_v22 = vpop.permute.xlu0 %744 }
 0x4d9   :  { %1532 = vtanh.f32 %v1938_v20  ;;  %v1941_v23 = vadd.f32 %v745_v22, %v729_v21 }
 0x4da   :  { %v695_v25 = vpop.permute.xlu1 %694 }
 0x4db   :  { %1534 = vtanh.f32 %v1941_v23  ;;  %v1945_v46 = vadd.f32 %v695_v25, %v680_v24 }
 0x4dc   :  { %v697_v27 = vpop.permute.xlu0 %696 }
 0x4dd   :  { %1536 = vtanh.f32 %v1945_v46  ;;  %v1949_v51 = vadd.f32 %v697_v27, %v681_v26 }
 0x4df   :  { %1538 = vtanh.f32 %v1949_v51 }
 0x4e3   :  { %v1533_v28 = vpop.eup %1532 }
 0x4e4   :  { %754 = vrot.lane.b32.xlu1 %v1533_v28, %s1708_s22 }
 0x4e5   :  { %v1535_v29 = vpop.eup %1534 }
 0x4e6   :  { %756 = vrot.lane.b32.xlu0 %v1535_v29, %s1708_s22 }
 0x4e7   :  { %v1537_v52 = vpop.eup %1536 }
 0x4e8   :  { %706 = vrot.lane.b32.xlu1 %v1537_v52, %s1708_s22 }
 0x4e9   :  { %v1539_v30 = vpop.eup %1538 }
 0x4ea   :  { %708 = vrot.lane.b32.xlu0 %v1539_v30, %s1708_s22 }
 0x4eb   :  { %v1956_v55 = vpop.permute.xlu1 %769 }
 0x4ec   :  { %vm774_vm10 = vcmp.eq.s32.totalorder %v1956_v55, 1 }
 0x4ed   :  { %v1958_v31 = vpop.permute.xlu0 %772 }
 0x4ee   :  { %vm775_vm11 = vcmp.eq.s32.totalorder %v1958_v31, 1 }
 0x556   :  { %v755_v33 = vpop.permute.xlu1 %754 }
 0x557   :  { %v760_v34 = vmul.f32 %v1525_v56, %v755_v33 }
 0x558   :  { %v757_v35 = vpop.permute.xlu0 %756 }
 0x559   :  { %v761_v36 = vmul.f32 %v1527_v59, %v757_v35  ;;  %v1964_v37 = vsel %vm774_vm10, %v760_v34, 0.0 }
 0x55a   :  { %v707_v40 = vpop.permute.xlu1 %706 }
 0x55b   :  { %v1968_v38 = vsel %vm775_vm11, %v761_v36, 0.0  ;;  %v1972_v43 = vmul.f32 %v1529_v1, %v707_v40 }
 0x55c   :  { %v815_v41 = vpack.c.bf16 %v1968_v38, %v1964_v37  ;;  %v709_v42 = vpop.permute.xlu0 %708 }
 0x55d   :  { %v1974_v44 = vmul.f32 %v1531_v6, %v709_v42  ;;  %v819_v6 = vunpack.c.h.bf16 %v817_v54  ;;  %v778_v54 = vsel %vm774_vm10, %v1938_v20, 0.0 }
 0x55e   :  { %874 = vrot.lane.b32.xlu1 %v815_v41, %s1709_s1 }
 0x55f   :  { %v814_v45 = vpack.c.bf16 %v1974_v44, %v1972_v43 }
 0x561   :  { %825 = vrot.lane.b32.xlu0 %v814_v45, %s1709_s1 }
 0x5d0   :  { %v875_v47 = vpop.permute.xlu1 %874 }
 0x5d1   :  { %1435 = vmatmul.mubr.msk.bf16.vlgmr.msra.gmra.mrb[16].mxu1 %vm315_vm7, %v875_v47 }
 0x5d2   :  { %1445 = vmatpush3.bf16.msra.mxu1 %v1801_v8  ;;  %1446 = vmatprep.mubr.msk.bf16.mxu1 %vm1706_vm1, %v1705_v9 }
 0x5d3   :  { %v826_v48 = vpop.permute.xlu0 %825 }
 0x5d4   :  { %1429 = vmatmul.mubr.msk.bf16.vlgmr.msra.gmra.mrb[16].mxu0 %vm315_vm7, %v826_v48 }
 0x5d5   :  { %1439 = vmatpush3.bf16.msra.mxu0 %v1808_v10  ;;  %1440 = vmatprep.mubr.msk.bf16.mxu0 %vm1706_vm1, %v1705_v9  ;;  %vm508_vm1 = vcmp.gt.s32.totalorder %v1862_v39, 0 }
 0x6a4   :  { %v913_v53 = vpop.f32.mrb[16].mxu1 }
 0x6a5   :  { %v920_v56 = vadd.f32 %v913_v53, %v822_v50  ;;  %v1436_v57 = vpop.f32.mrb[17].mxu1  ;;  %v780_v50 = vsel %vm762_vm12, 1, %v1704_v0  ;;  %v781_v53 = vsel %vm763_vm13, 1, %v1704_v0 }
 0x6a6   :  { %v916_v59 = vpop.f32.mrb[18].mxu1 }
 0x6a7   :  { %1540 = vtanh.f32 %v920_v56  ;;  %v921_v8 = vadd.f32 %v916_v59, %v823_v58  ;;  %v1437_v63 = vpop.f32.mrb[19].mxu1  ;;  %v864_v1 = vpop.f32.mrb[16].mxu0  ;;  %v1342_v17 = vmul.f32 -1.442695, %v920_v56  ;;  %v779_v58 = vsel %vm775_vm11, %v1941_v23, 0.0 }
 0x6a8   :  { %v871_v2 = vadd.f32 %v864_v1, %v818_v62  ;;  %v1430_v3 = vpop.f32.mrb[17].mxu0 }
 0x6a9   :  { %1542 = vtanh.f32 %v921_v8  ;;  %v867_v10 = vpop.f32.mrb[18].mxu0  ;;  %v1343_v18 = vmul.f32 -1.442695, %v921_v8 }
 0x6aa   :  { %v872_v7 = vadd.f32 %v867_v10, %v819_v6  ;;  %v1431_v9 = vpop.f32.mrb[19].mxu0  ;;  %1544 = vtanh.f32 %v871_v2  ;;  %v1340_v19 = vmul.f32 -1.442695, %v871_v2 }
 0x6ac   :  { %1546 = vtanh.f32 %v872_v7  ;;  %v1341_v21 = vmul.f32 -1.442695, %v872_v7 }
 0x6ad   :  { %1548 = vpow2.f32 %v1342_v17 }
 0x6ae   :  { %1550 = vpow2.f32 %v1343_v18 }
 0x6af   :  { %1552 = vpow2.f32 %v1340_v19 }
 0x6b0   :  { %1554 = vpow2.f32 %v1341_v21 }
 0x6b1   :  { %v1541_v13 = vpop.eup %1540 }
 0x6b2   :  { %988 = vrot.lane.b32.xlu1 %v1541_v13, %s1707_s6 }
 0x6b3   :  { %v1543_v14 = vpop.eup %1542 }
 0x6b4   :  { %990 = vrot.lane.b32.xlu0 %v1543_v14, %s1707_s6  ;;  %v1545_v15 = vpop.eup %1544 }
 0x6b6   :  { %940 = vrot.lane.b32.xlu1 %v1545_v15, %s1707_s6  ;;  %v1547_v16 = vpop.eup %1546 }
 0x6b7   :  { %v1549_v22 = vpop.eup %1548 }
 0x6b8   :  { %942 = vrot.lane.b32.xlu0 %v1547_v16, %s1707_s6  ;;  %v1551_v24 = vpop.eup %1550  ;;  %v976_v25 = vadd.f32 1.0, %v1549_v22 }
 0x6b9   :  { %v1553_v26 = vpop.eup %1552  ;;  %v977_v27 = vadd.f32 1.0, %v1551_v24 }
 0x6ba   :  { %v1555_v28 = vpop.eup %1554  ;;  %1556 = vrcp.f32 %v976_v25  ;;  %v928_v29 = vadd.f32 1.0, %v1553_v26 }
 0x6bb   :  { %1558 = vrcp.f32 %v977_v27  ;;  %v929_v52 = vadd.f32 1.0, %v1555_v28 }
 0x6bc   :  { %1560 = vrcp.f32 %v928_v29 }
 0x6bd   :  { %1562 = vrcp.f32 %v929_v52 }
 0x6c4   :  { %v1557_v30 = vpop.eup %1556 }
 0x6c5   :  { %v1559_v35 = vpop.eup %1558  ;;  %v984_v56 = vmul.f32 %v1557_v30, %v778_v54 }
 0x6c6   :  { %v1561_v41 = vpop.eup %1560  ;;  %v985_v8 = vmul.f32 %v1559_v35, %v779_v58 }
 0x6c7   :  { %v1563_v47 = vpop.eup %1562  ;;  %v936_v1 = vmul.f32 %v1561_v41, %v1945_v46 }
 0x6c8   :  { %v937_v3 = vmul.f32 %v1563_v47, %v1949_v51 }
 0x724   :  { %v989_v33 = vpop.permute.xlu1 %988 }
 0x725   :  { %v994_v34 = vmul.f32 %v1557_v30, %v989_v33 }
 0x726   :  { %v991_v36 = vpop.permute.xlu0 %990 }
 0x727   :  { %998 = vrot.lane.b32.xlu1 %v994_v34, %s1708_s22  ;;  %v995_v40 = vmul.f32 %v1559_v35, %v991_v36 }
 0x728   :  { %v941_v42 = vpop.permute.xlu1 %940 }
 0x729   :  { %v946_v45 = vmul.f32 %v1561_v41, %v941_v42  ;;  %1000 = vrot.lane.b32.xlu0 %v995_v40, %s1708_s22 }
 0x72a   :  { %v943_v48 = vpop.permute.xlu0 %942 }
 0x72b   :  { %v947_v49 = vmul.f32 %v1563_v47, %v943_v48  ;;  %950 = vrot.lane.b32.xlu1 %v946_v45, %s1708_s22 }
 0x72d   :  { %952 = vrot.lane.b32.xlu0 %v947_v49, %s1708_s22 }
 0x72f   :  { %783 = vperm.xlu1 %1465, %v780_v50  }
 0x731   :  { %786 = vperm.xlu0 %1464, %v781_v53  }
 0x799   :  { %v999_v57 = vpop.permute.xlu1 %998 }
 0x79a   :  { %v2006_v59 = vadd.f32 %v999_v57, %v984_v56 }
 0x79b   :  { %v1001_v62 = vpop.permute.xlu0 %1000 }
 0x79c   :  { %1564 = vtanh.f32 %v2006_v59  ;;  %v2009_v63 = vadd.f32 %v1001_v62, %v985_v8 }
 0x79d   :  { %v951_v2 = vpop.permute.xlu1 %950 }
 0x79e   :  { %1566 = vtanh.f32 %v2009_v63  ;;  %v2013_v20 = vadd.f32 %v951_v2, %v936_v1 }
 0x79f   :  { %v953_v6 = vpop.permute.xlu0 %952 }
 0x7a0   :  { %1568 = vtanh.f32 %v2013_v20  ;;  %v2017_v23 = vadd.f32 %v953_v6, %v937_v3 }
 0x7a2   :  { %1570 = vtanh.f32 %v2017_v23 }
 0x7a6   :  { %v1565_v10 = vpop.eup %1564 }
 0x7a7   :  { %1010 = vrot.lane.b32.xlu1 %v1565_v10, %s1708_s22 }
 0x7a8   :  { %v1567_v7 = vpop.eup %1566 }
 0x7a9   :  { %1012 = vrot.lane.b32.xlu0 %v1567_v7, %s1708_s22 }
 0x7aa   :  { %v1569_v46 = vpop.eup %1568 }
 0x7ab   :  { %962 = vrot.lane.b32.xlu1 %v1569_v46, %s1708_s22 }
 0x7ac   :  { %v1571_v9 = vpop.eup %1570 }
 0x7ad   :  { %964 = vrot.lane.b32.xlu0 %v1571_v9, %s1708_s22 }
 0x7ae   :  { %v2024_v51 = vpop.permute.xlu1 %783 }
 0x7af   :  { %vm788_vm14 = vcmp.eq.s32.totalorder %v2024_v51, 1 }
 0x7b0   :  { %v2026_v13 = vpop.permute.xlu0 %786  ;;  %v1020_v39 = vsel %vm788_vm14, %v2006_v59, 0.0 }
 0x7b1   :  { %vm789_vm15 = vcmp.eq.s32.totalorder %v2026_v13, 1 }
 0x819   :  { %v1011_v14 = vpop.permute.xlu1 %1010 }
 0x81a   :  { %v1016_v15 = vmul.f32 %v1557_v30, %v1011_v14  ;;  %v1049_v30 = vld [vmem:[#allocation2 + $0x18] sm:$0xff] }
 0x81b   :  { %v1013_v16 = vpop.permute.xlu0 %1012 }
 0x81c   :  { %v1017_v17 = vmul.f32 %v1559_v35, %v1013_v16  ;;  %v2032_v19 = vsel %vm788_vm14, %v1016_v15, 0.0  ;;  %v1050_v35 = vunpack.c.l.bf16 %v1049_v30 }
 0x81d   :  { %v963_v18 = vpop.permute.xlu1 %962 }
 0x81e   :  { %v2036_v21 = vsel %vm789_vm15, %v1017_v17, 0.0  ;;  %v2040_v25 = vmul.f32 %v1561_v41, %v963_v18  ;;  %v1052_v41 = vld [vmem:[#allocation3] sm:$0xff] }
 0x81f   :  { %v1047_v22 = vpack.c.bf16 %v2036_v21, %v2032_v19  ;;  %v965_v24 = vpop.permute.xlu0 %964  ;;  %v1053_v50 = vunpack.c.l.bf16 %v1052_v41  ;;  %v1054_v56 = vunpack.c.h.bf16 %v1052_v41  ;;  %v525_v41 = vsel %vm507_vm0, 1, %v1704_v0 }
 0x820   :  { %v2042_v26 = vmul.f32 %v1563_v47, %v965_v24  ;;  %v1051_v47 = vunpack.c.h.bf16 %v1049_v30 }
 0x821   :  { %1105 = vrot.lane.b32.xlu0 %v1047_v22, %s1709_s1 }
 0x822   :  { %v1046_v27 = vpack.c.bf16 %v2042_v26, %v2040_v25 }
 0x824   :  { %1056 = vrot.lane.b32.xlu1 %v1046_v27, %s1709_s1 }
 0x893   :  { %v1106_v28 = vpop.permute.xlu0 %1105 }
 0x894   :  { %1447 = vmatmul.mubr.msk.bf16.vlgmr.msra.gmra.mrb[20].mxu1 %vm315_vm7, %v1106_v28 }
 0x896   :  { %v1057_v29 = vpop.permute.xlu1 %1056 }
 0x897   :  { %1441 = vmatmul.mubr.msk.bf16.vlgmr.msra.gmra.mrb[20].mxu0 %vm315_vm7, %v1057_v29 }
 0x967   :  { %v1144_v52 = vpop.f32.mrb[20].mxu1 }
 0x968   :  { %v1448_v33 = vpop.f32.mrb[21].mxu1  ;;  %v1151_v54 = vadd.f32 %v1144_v52, %v1053_v50 }
 0x969   :  { %v1147_v34 = vpop.f32.mrb[22].mxu1 }
 0x96a   :  { %v1095_v36 = vpop.f32.mrb[20].mxu0  ;;  %v1449_v40 = vpop.f32.mrb[23].mxu1  ;;  %v1152_v57 = vadd.f32 %v1147_v34, %v1054_v56  ;;  %v1348_v6 = vmul.f32 -1.442695, %v1151_v54 }
 0x96b   :  { %v1442_v42 = vpop.f32.mrb[21].mxu0  ;;  %v1102_v45 = vadd.f32 %v1095_v36, %v1050_v35 }
 0x96c   :  { %v1098_v48 = vpop.f32.mrb[22].mxu0  ;;  %v1349_v10 = vmul.f32 -1.442695, %v1152_v57  ;;  %v526_v42 = vsel %vm508_vm1, 1, %v1704_v0  ;;  %v1021_v0 = vsel %vm789_vm15, %v2009_v63, 0.0 }
 0x96d   :  { %v1443_v49 = vpop.f32.mrb[23].mxu0  ;;  %v1103_v53 = vadd.f32 %v1098_v48, %v1051_v47  ;;  %1572 = vtanh.f32 %v1102_v45  ;;  %v1346_v2 = vmul.f32 -1.442695, %v1102_v45 }
 0x96f   :  { %1574 = vtanh.f32 %v1103_v53  ;;  %v1347_v3 = vmul.f32 -1.442695, %v1103_v53 }
 0x970   :  { %1576 = vtanh.f32 %v1151_v54 }
 0x971   :  { %1578 = vtanh.f32 %v1152_v57 }
 0x972   :  { %1580 = vpow2.f32 %v1346_v2 }
 0x973   :  { %1582 = vpow2.f32 %v1347_v3 }
 0x974   :  { %1584 = vpow2.f32 %v1348_v6  ;;  %v790_v6 = vsel %vm788_vm14, %v1972_v43, 0.0 }
 0x975   :  { %1586 = vpow2.f32 %v1349_v10 }
 0x977   :  { %v1573_v58 = vpop.eup %1572 }
 0x978   :  { %1171 = vrot.lane.b32.xlu1 %v1573_v58, %s1707_s6 }
 0x979   :  { %v1575_v8 = vpop.eup %1574 }
 0x97a   :  { %1173 = vrot.lane.b32.xlu0 %v1575_v8, %s1707_s6  ;;  %v1577_v62 = vpop.eup %1576 }
 0x97b   :  { %v1579_v1 = vpop.eup %1578 }
 0x97c   :  { %1219 = vrot.lane.b32.xlu1 %v1577_v62, %s1707_s6  ;;  %v1581_v7 = vpop.eup %1580 }
 0x97d   :  { %v1583_v46 = vpop.eup %1582  ;;  %v1159_v9 = vadd.f32 1.0, %v1581_v7 }
 0x97e   :  { %1221 = vrot.lane.b32.xlu0 %v1579_v1, %s1707_s6  ;;  %v1585_v14 = vpop.eup %1584  ;;  %v1160_v15 = vadd.f32 1.0, %v1583_v46 }
 0x97f   :  { %v1587_v16 = vpop.eup %1586  ;;  %v1207_v17 = vadd.f32 1.0, %v1585_v14  ;;  %1588 = vrcp.f32 %v1159_v9 }
 0x980   :  { %v1208_v18 = vadd.f32 1.0, %v1587_v16  ;;  %1590 = vrcp.f32 %v1160_v15 }
 0x981   :  { %1592 = vrcp.f32 %v1207_v17 }
 0x982   :  { %1594 = vrcp.f32 %v1208_v18 }
 0x989   :  { %v2054_v22 = vpop.eup %1588 }
 0x98a   :  { %v2057_v28 = vpop.eup %1590  ;;  %v1167_v32 = vmul.f32 %v2054_v22, %v2013_v20 }
 0x98b   :  { %v2061_v30 = vpop.eup %1592  ;;  %v1168_v48 = vmul.f32 %v2057_v28, %v2017_v23 }
 0x98c   :  { %v2066_v35 = vpop.eup %1594  ;;  %v1215_v53 = vmul.f32 %v2061_v30, %v1020_v39 }
 0x98d   :  { %v1216_v56 = vmul.f32 %v2066_v35, %v1021_v0 }
 0x9ea   :  { %v1172_v24 = vpop.permute.xlu1 %1171 }
 0x9eb   :  { %v1177_v27 = vmul.f32 %v2054_v22, %v1172_v24 }
 0x9ec   :  { %v1174_v29 = vpop.permute.xlu0 %1173 }
 0x9ed   :  { %v1178_v52 = vmul.f32 %v2057_v28, %v1174_v29  ;;  %1181 = vrot.lane.b32.xlu1 %v1177_v27, %s1708_s22 }
 0x9ee   :  { %v1220_v33 = vpop.permute.xlu1 %1219 }
 0x9ef   :  { %v1225_v34 = vmul.f32 %v2061_v30, %v1220_v33  ;;  %1183 = vrot.lane.b32.xlu0 %v1178_v52, %s1708_s22 }
 0x9f0   :  { %v1222_v36 = vpop.permute.xlu0 %1221 }
 0x9f1   :  { %v1226_v40 = vmul.f32 %v2066_v35, %v1222_v36  ;;  %1229 = vrot.lane.b32.xlu1 %v1225_v34, %s1708_s22 }
 0x9f3   :  { %1231 = vrot.lane.b32.xlu0 %v1226_v40, %s1708_s22 }
 0x9f5   :  { %528 = vperm.xlu1 %1465, %v525_v41  }
 0x9f7   :  { %531 = vperm.xlu0 %1464, %v526_v42  }
 0xa5f   :  { %v1182_v45 = vpop.permute.xlu1 %1181 }
 0xa60   :  { %v1187_v47 = vadd.f32 %v1182_v45, %v1167_v32 }
 0xa61   :  { %v1184_v49 = vpop.permute.xlu0 %1183 }
 0xa62   :  { %1596 = vtanh.f32 %v1187_v47  ;;  %v1188_v50 = vadd.f32 %v1184_v49, %v1168_v48 }
 0xa63   :  { %v1230_v54 = vpop.permute.xlu1 %1229 }
 0xa64   :  { %1598 = vtanh.f32 %v1188_v50  ;;  %v1235_v20 = vadd.f32 %v1230_v54, %v1215_v53 }
 0xa65   :  { %v1232_v57 = vpop.permute.xlu0 %1231 }
 0xa66   :  { %1600 = vtanh.f32 %v1235_v20  ;;  %v1236_v23 = vadd.f32 %v1232_v57, %v1216_v56 }
 0xa68   :  { %1602 = vtanh.f32 %v1236_v23 }
 0xa6c   :  { %v1597_v58 = vpop.eup %1596 }
 0xa6d   :  { %1193 = vrot.lane.b32.xlu1 %v1597_v58, %s1708_s22 }
 0xa6e   :  { %v1599_v59 = vpop.eup %1598 }
 0xa6f   :  { %1195 = vrot.lane.b32.xlu0 %v1599_v59, %s1708_s22 }
 0xa70   :  { %v1601_v8 = vpop.eup %1600 }
 0xa71   :  { %1241 = vrot.lane.b32.xlu1 %v1601_v8, %s1708_s22 }
 0xa72   :  { %v1603_v62 = vpop.eup %1602 }
 0xa73   :  { %1243 = vrot.lane.b32.xlu0 %v1603_v62, %s1708_s22 }
 0xa74   :  { %v529_v63 = vpop.permute.xlu1 %528 }
 0xa75   :  { %vm533_vm2 = vcmp.eq.s32.totalorder %v529_v63, 1 }
 0xa76   :  { %v535_v1 = vsel %vm533_vm2, %v1902_v11, 0.0  ;;  %v532_v2 = vpop.permute.xlu0 %531  ;;  %v791_v11 = vsel %vm789_vm15, %v1974_v44, 0.0 }
 0xa77   :  { %vm534_vm3 = vcmp.eq.s32.totalorder %v532_v2, 1  ;;  %539 = vrot.lane.b32.xlu1 %v535_v1, %s1709_s1 }
 0xa78   :  { %v536_v3 = vsel %vm534_vm3, %v1904_v12, 0.0 }
 0xa79   :  { %541 = vrot.lane.b32.xlu0 %v536_v3, %s1709_s1 }
 0xa7b   :  { %549 = vrot.lane.b32.xlu1 %v1894_v4, %s1709_s1  ;;  %v1022_v4 = vsel %vm774_vm10, %v2040_v25, 0.0 }
 0xa7d   :  { %551 = vrot.lane.b32.xlu0 %v1898_v5, %s1709_s1  ;;  %v1023_v5 = vsel %vm775_vm11, %v2042_v26, 0.0 }
 0xa7f   :  { %794 = vrot.lane.b32.xlu1 %v790_v6, %s1709_s1 }
 0xa81   :  { %796 = vrot.lane.b32.xlu0 %v791_v11, %s1709_s1 }
 0xa83   :  { %805 = vrot.lane.b32.xlu1 %v1964_v37, %s1709_s1 }
 0xa85   :  { %807 = vrot.lane.b32.xlu0 %v1968_v38, %s1709_s1 }
 0xa87   :  { %1026 = vrot.lane.b32.xlu1 %v1022_v4, %s1709_s1 }
 0xa89   :  { %1028 = vrot.lane.b32.xlu0 %v1023_v5, %s1709_s1 }
 0xa8b   :  { %1037 = vrot.lane.b32.xlu1 %v2032_v19, %s1709_s1 }
 0xa8d   :  { %1039 = vrot.lane.b32.xlu0 %v2036_v21, %s1709_s1 }
 0xadf   :  { %v1194_v12 = vpop.permute.xlu1 %1193 }
 0xae0   :  { %v1199_v37 = vmul.f32 %v2054_v22, %v1194_v12 }
 0xae1   :  { %v1196_v38 = vpop.permute.xlu0 %1195 }
 0xae2   :  { %v1200_v55 = vmul.f32 %v2057_v28, %v1196_v38  ;;  %v1251_v43 = vsel %vm519_vm5, %v1199_v37, 0.0 }
 0xae3   :  { %1255 = vrot.lane.b32.xlu1 %v1251_v43, %s1709_s1  ;;  %v1242_v31 = vpop.permute.xlu1 %1241 }
 0xae4   :  { %v1247_v44 = vmul.f32 %v2061_v30, %v1242_v31  ;;  %v1252_v51 = vsel %vm520_vm6, %v1200_v55, 0.0 }
 0xae5   :  { %1257 = vrot.lane.b32.xlu0 %v1252_v51, %s1709_s1  ;;  %v1244_v13 = vpop.permute.xlu0 %1243 }
 0xae6   :  { %v1248_v19 = vmul.f32 %v2066_v35, %v1244_v13  ;;  %v1249_v21 = vsel %vm533_vm2, %v1247_v44, 0.0 }
 0xae7   :  { %1266 = vrot.lane.b32.xlu1 %v1249_v21, %s1709_s1 }
 0xae8   :  { %v1250_v61 = vsel %vm534_vm3, %v1248_v19, 0.0 }
 0xae9   :  { %v540_v25 = vpop.permute.xlu1 %539  ;;  %1268 = vrot.lane.b32.xlu0 %v1250_v61, %s1709_s1 }
 0xaea   :  { %545 = vst.msk [vmem:[#allocation9] sm:$0xff] %vm315_vm7, %v540_v25 }
 0xaeb   :  { %v542_v26 = vpop.permute.xlu0 %541 }
 0xaec   :  { %546 = vst.msk [vmem:[#allocation9 + $0x8] sm:$0xff] %vm315_vm7, %v542_v26 }
 0xaed   :  { %v550_v60 = vpop.permute.xlu1 %549 }
 0xaee   :  { %556 = vst.msk [vmem:[#allocation10 + $0x30] sm:$0xff] %vm315_vm7, %v550_v60 }
 0xaef   :  { %v552_v10 = vpop.permute.xlu0 %551 }
 0xaf0   :  { %557 = vst.msk [vmem:[#allocation10 + $0x38] sm:$0xff] %vm315_vm7, %v552_v10 }
 0xaf1   :  { %v795_v7 = vpop.permute.xlu1 %794 }
 0xaf2   :  { %801 = vst.msk [vmem:[#allocation9 + $0x10] sm:$0xff] %vm315_vm7, %v795_v7 }
 0xaf3   :  { %v797_v46 = vpop.permute.xlu0 %796 }
 0xaf4   :  { %802 = vst.msk [vmem:[#allocation9 + $0x18] sm:$0xff] %vm315_vm7, %v797_v46 }
 0xaf5   :  { %v806_v9 = vpop.permute.xlu1 %805 }
 0xaf6   :  { %812 = vst.msk [vmem:[#allocation10 + $0x20] sm:$0xff] %vm315_vm7, %v806_v9 }
 0xaf7   :  { %v808_v14 = vpop.permute.xlu0 %807 }
 0xaf8   :  { %813 = vst.msk [vmem:[#allocation10 + $0x28] sm:$0xff] %vm315_vm7, %v808_v14 }
 0xaf9   :  { %v1027_v15 = vpop.permute.xlu1 %1026 }
 0xafa   :  { %1033 = vst.msk [vmem:[#allocation9 + $0x20] sm:$0xff] %vm315_vm7, %v1027_v15 }
 0xafb   :  { %v1029_v16 = vpop.permute.xlu0 %1028 }
 0xafc   :  { %1034 = vst.msk [vmem:[#allocation9 + $0x28] sm:$0xff] %vm315_vm7, %v1029_v16 }
 0xafd   :  { %v1038_v17 = vpop.permute.xlu1 %1037 }
 0xafe   :  { %1044 = vst.msk [vmem:[#allocation10 + $0x10] sm:$0xff] %vm315_vm7, %v1038_v17 }
 0xaff   :  { %v1040_v18 = vpop.permute.xlu0 %1039 }
 0xb00   :  { %1045 = vst.msk [vmem:[#allocation10 + $0x18] sm:$0xff] %vm315_vm7, %v1040_v18 }
 0xb55   :  { %v1256_v22 = vpop.permute.xlu1 %1255 }
 0xb56   :  { %1262 = vst.msk [vmem:[#allocation9 + $0x30] sm:$0xff] %vm315_vm7, %v1256_v22 }
 0xb57   :  { %v1258_v24 = vpop.permute.xlu0 %1257 }
 0xb58   :  { %1263 = vst.msk [vmem:[#allocation9 + $0x38] sm:$0xff] %vm315_vm7, %v1258_v24 }
 0xb59   :  { %v1267_v27 = vpop.permute.xlu1 %1266 }
 0xb5a   :  { %1659 = shalt.err (!%p1656_p6)
}
 0xb5b   :  { %s1660_s12 = scalar_lea.hbm %s2186_s8, 1024 }
 0xb5c   :  { %p1661_p7 = scmp.ne.s32.totalorder %s2186_s8, %s1660_s12  ;;  %p1664_p8 = scmp.lt.u32.totalorder %s1660_s12, %s2186_s8 }
 0xb5e   :  { %p1666_p9 = pnand %p1664_p8, %p1661_p7 }
 0xb60   :  { %1669 = shalt.err (!%p1666_p9)
}
 0xb61   :  { %s1712_s15 = smov 128   ;;  %s1713_s16 = smov 8   ;;  %1272 = vst.msk [vmem:[#allocation10] sm:$0xff] %vm315_vm7, %v1267_v27  ;;  %v1269_v28 = vpop.permute.xlu0 %1268 }
 0xb62   :  { %1285 = dma.vmem_to_hbm [thread:$0]  %s1280_s26, 1024, %s2186_s8, [#allocation6], %s1712_s15, %s1712_s15, %s1713_s16   ;;  %1273 = vst.msk [vmem:[#allocation10 + $0x8] sm:$0xff] %vm315_vm7, %v1269_v28 }
 0xb63   :  { %s1670_s2 = scalar_lea.vmem %s1292_s28, 1024  ;;  %p1675_p11 = scmp.lt.s32.totalorder %s1292_s28, %s1292_s28 }
 0xb64   :  { %p1671_p10 = scmp.ne.s32.totalorder %s1292_s28, %s1670_s2  ;;  %p1676_p12 = scmp.lt.s32.totalorder %s1670_s2, %s1670_s2 }
 0xb66   :  { %p1677_p13 = por %p1676_p12, %p1675_p11 }
 0xb68   :  { %p1678_p0 = pnand %p1677_p13, %p1671_p10 }
 0xb6a   :  { %1681 = shalt.err (!%p1678_p0)
}
 0xb6b   :  { %s1682_s5 = scalar_lea.hbm %s2187_s9, 1024 }
 0xb6c   :  { %p1683_p1 = scmp.ne.s32.totalorder %s2187_s9, %s1682_s5  ;;  %p1686_p2 = scmp.lt.u32.totalorder %s1682_s5, %s2187_s9 }
 0xb6e   :  { %p1688_p3 = pnand %p1686_p2, %p1683_p1 }
 0xb70   :  { %1691 = shalt.err (!%p1688_p3)
}
 0xb71   :  { %1297 = dma.vmem_to_hbm [thread:$0]  %s1292_s28, 1024, %s2187_s9, [#allocation11], %s1712_s15, %s1712_s15, %s1713_s16  }
 0xb72   :  { %1696 = dma.done.wait [#allocation6], 1024  }
 0xb73   :  { %1697 = vsyncadd [#allocation6], 4294966272 }
 0xb74   :  { %1698 = dma.done.wait [#allocation11], 1024  }
 0xb75   :  { %1699 = vsyncadd [#allocation11], 4294966272 }
 0xb76   :  { %1304 = vsyncpa [#allocation5], 1 }
 0xb77   :  { %1305 = vsyncpa [#allocation8], 1 }
 0xb78   :  { %1306 = vsyncpa [#allocation6], 1 }
 0xb79   :  { %1307 = vsyncpa [#allocation11], 1 }

</bundles_post_ra>
